<compile_context>
chip_gen: v7x
topology: tpu7x:2x2x1
jax: 0.10.0
libtpu: 0.0.40
codegen_flags: <defaults>
</compile_context>

<pallas_src>
import functools
import math

import jax
import jax.numpy as jnp
from jax.experimental import pallas as pl
from jax.experimental.pallas import tpu as pltpu

_LOG2PI = math.log(2.0 * math.pi)


# --------------------------------------------------------------------------------------
# In-kernel helpers
# --------------------------------------------------------------------------------------
def _shift_prev(z, first_col_mask):
    """Column l holds z[:, l-1]; zero where l % T == 0 (conv padding + batch boundary)."""
    return jnp.where(first_col_mask, 0.0, pltpu.roll(z, shift=1, axis=1))


def _shift_next(z, last_col_mask):
    """Column l holds z[:, l+1]; zero where l % T == T-1.

    pltpu.roll requires a non-negative shift, so roll right by L-1 (== roll left by 1).
    """
    return jnp.where(last_col_mask, 0.0, pltpu.roll(z, shift=z.shape[1] - 1, axis=1))


# --------------------------------------------------------------------------------------
# Fused kernel: depth x RevNetStep + GaussianPrior, one invocation, no grid.
# --------------------------------------------------------------------------------------
def _glow_fused_kernel(x_ref, w1x1_ref, w1s_ref, b1_ref, w2_ref, b2_ref,
                       w3s_ref, b3_ref, z_ref, obj_ref, *, T):
    C, BT = x_ref.shape
    ch = C // 2
    H = w2_ref.shape[1]
    depth = w1x1_ref.shape[0]
    inv_n = 1.0 / float(BT)            # sum_size = B * T

    # Boundary masks for the k=3 convs — hoisted, computed once, reused by every layer.
    lane_ch = jax.lax.broadcasted_iota(jnp.int32, (ch, BT), 1) % T
    first_ch = lane_ch == 0
    last_ch = lane_ch == (T - 1)
    lane_h = jax.lax.broadcasted_iota(jnp.int32, (H, BT), 1) % T
    first_h = lane_h == 0
    last_h = lane_h == (T - 1)

    x = x_ref[...]                                     # [C, B*T]
    obj = jnp.zeros((1, BT), jnp.float32)              # per-lane objective accumulator
    z1 = x[:ch, :]
    z2 = x[ch:, :]

    for d in range(depth):                             # static unroll over depth
        # --- ActNorm (data-dependent init, scale=1, logscale_factor=1) ---
        m = jnp.sum(x, axis=1, keepdims=True) * inv_n           # [C, 1]
        bvec = -m
        # Matches torch as written: vars = mean((input - b)^2) with b = -mean.
        var = jnp.sum((x - bvec) ** 2, axis=1, keepdims=True) * inv_n
        logs = jnp.log(1.0 / jnp.sqrt(var) + 1e-6)              # [C, 1]
        # dlogdet_actnorm = sum(logs) * T ; adding the scalar to each of a sample's T
        # lanes yields exactly that after the per-batch segment fold.
        obj = obj + jnp.sum(logs)
        y = (x + bvec) * jnp.exp(logs)

        # --- Invertible 1x1 conv (its log|det W| * T is weight-only, added outside) ---
        y = jnp.dot(w1x1_ref[d], y, preferred_element_type=jnp.float32)
        z1 = y[:ch, :]
        z2 = y[ch:, :]

        # --- Affine coupling: NN(z1) with tap-stacked k=3 convs (one MXU push each) ---
        st = jnp.concatenate(
            [_shift_prev(z1, first_ch), z1, _shift_next(z1, last_ch)], axis=0)  # [3*ch, BT]
        h = jnp.maximum(
            jnp.dot(w1s_ref[d], st, preferred_element_type=jnp.float32) + b1_ref[d], 0.0)
        h = jnp.maximum(
            jnp.dot(w2_ref[d], h, preferred_element_type=jnp.float32) + b2_ref[d], 0.0)
        st = jnp.concatenate(
            [_shift_prev(h, first_h), h, _shift_next(h, last_h)], axis=0)       # [3*H, BT]
        h = jnp.dot(w3s_ref[d], st, preferred_element_type=jnp.float32) + b3_ref[d]
        # w3s/b3 rows were pre-permuted: rows [:ch] == h[:,0::2] (shift),
        # rows [ch:] == h[:,1::2] (scale input) of the original channel ordering.
        shift = h[:ch, :]
        scale = jax.nn.sigmoid(h[ch:, :] + 2.0)
        z2 = (z2 + shift) * scale
        obj = obj + jnp.sum(jnp.log(scale), axis=0, keepdims=True)   # coupling logdet

        if d + 1 < depth:
            x = jnp.concatenate([z1, z2], axis=0)      # needed full-C for next ActNorm/W

    # --- GaussianPrior (learntop=False): mean=0, logsd=0 ---
    obj = obj + jnp.sum(-0.5 * (_LOG2PI + z1 * z1), axis=0, keepdims=True)
    obj = obj + jnp.sum(-0.5 * (_LOG2PI + z2 * z2), axis=0, keepdims=True)

    # Final output via two slice stores (no concat on the last layer).
    z_ref[:ch, :] = z1
    z_ref[ch:, :] = z2
    obj_ref[...] = obj                                  # lane-dense [1, B*T]


# --------------------------------------------------------------------------------------
# pallas_call wrapper (single fused kernel, whole arrays in VMEM, no grid)
# --------------------------------------------------------------------------------------
def glow_mt_forward(x, objective, params):
    B, C, T = x.shape
    BT = B * T
    x_flat = jnp.transpose(x, (1, 0, 2)).reshape(C, BT)   # lane index = b*T + t

    kernel = functools.partial(_glow_fused_kernel, T=T)
    vspec = lambda: pl.BlockSpec(memory_space=pltpu.MemorySpace.VMEM)

    z_flat, obj_lane = pl.pallas_call(
        kernel,
        out_shape=(jax.ShapeDtypeStruct((C, BT), jnp.float32),
                   jax.ShapeDtypeStruct((1, BT), jnp.float32)),
        in_specs=[vspec() for _ in range(8)],
        out_specs=(vspec(), vspec()),
    )(x_flat, params["w1x1"], params["w1s"], params["b1"],
      params["w2"], params["b2"], params["w3s"], params["b3"])

    z = z_flat.reshape(C, B, T).transpose(1, 0, 2)         # back to [B, C, T]
    # Per-batch fold of the lane-resident objective, plus the weight-only
    # 1x1-conv log-determinants (sum over depth of log|det W|) * T.
    obj_contrib = obj_lane[0].reshape(B, T).sum(axis=1)
    objective = objective + obj_contrib + params["wlogdet_sum"] * T
    return z, objective


# --------------------------------------------------------------------------------------
# Parameter setup (plain-JAX glue; deterministic). Weight-only work (QR init, slogdet,
# zero-init-conv scale folding, tap stacking, channel permutation) is done ONCE here.
# --------------------------------------------------------------------------------------
def init_params(key, C, H, depth):
    ch = C // 2
    perm = jnp.array(list(range(0, C, 2)) + list(range(1, C, 2)))
    w1x1_l, w1s_l, b1_l, w2_l, b2_l, w3s_l, b3_l = [], [], [], [], [], [], []
    wlogdet_sum = jnp.float32(0.0)
    for _ in range(depth):
        key, *ks = jax.random.split(key, 9)
        # Invertible1x1Conv: QR-orthogonal init (as in reset_parameters).
        w1x1 = jnp.linalg.qr(jax.random.normal(ks[0], (C, C), jnp.float32))[0]
        _, lad = jnp.linalg.slogdet(w1x1)
        wlogdet_sum = wlogdet_sum + lad
        # NN hidden convs (weight_norm is the identity at init: w = g*v/||v||, g=||v||).
        w1 = 0.1 * jax.random.normal(ks[1], (3, H, ch), jnp.float32)   # taps t-1,t,t+1
        b1 = 0.1 * jax.random.normal(ks[2], (H, 1), jnp.float32)
        w2 = 0.1 * jax.random.normal(ks[3], (H, H), jnp.float32)
        b2 = 0.1 * jax.random.normal(ks[4], (H, 1), jnp.float32)
        # Conv1dZeroInit zero-inits weight/bias/logs (=> shift=0, scale=sigmoid(2));
        # small deterministic random values used so the hot path actually computes.
        w3 = 0.05 * jax.random.normal(ks[5], (3, C, H), jnp.float32)
        b3 = 0.05 * jax.random.normal(ks[6], (C, 1), jnp.float32)
        logs3 = 0.01 * jax.random.normal(ks[7], (C, 1), jnp.float32)
        s3 = jnp.exp(logs3 * 3.0)                      # logscale_factor=3 of the 0-init conv
        w3_eff = w3 * s3[None, :, :]
        b3_eff = b3 * s3
        # Permute output channels: even (shift) first, odd (scale) second -> contiguous
        # slices in the kernel instead of strided h[:,0::2]/h[:,1::2].
        w3_p = w3_eff[:, perm, :]
        b3_p = b3_eff[perm, :]
        # Tap-stack k=3 conv weights to [Cout, 3*Cin] = hstack(tap_prev, tap_cur, tap_next).
        w1s = jnp.concatenate([w1[0], w1[1], w1[2]], axis=1)           # [H, 3*ch]
        w3s = jnp.concatenate([w3_p[0], w3_p[1], w3_p[2]], axis=1)     # [C, 3*H]

        w1x1_l.append(w1x1); w1s_l.append(w1s); b1_l.append(b1)
        w2_l.append(w2); b2_l.append(b2); w3s_l.append(w3s); b3_l.append(b3_p)

    return dict(
        w1x1=jnp.stack(w1x1_l), w1s=jnp.stack(w1s_l), b1=jnp.stack(b1_l),
        w2=jnp.stack(w2_l), b2=jnp.stack(b2_l),
        w3s=jnp.stack(w3s_l), b3=jnp.stack(b3_l),
        wlogdet_sum=jnp.asarray(wlogdet_sum, jnp.float32),
    )


# --------------------------------------------------------------------------------------
if __name__ == "__main__":
    B, C, T, H, DEPTH = 2, 8, 128, 64, 2

    key = jax.random.PRNGKey(0)
    kx, kp = jax.random.split(key)
    x = jax.random.normal(kx, (B, C, T), jnp.float32)
    objective = jnp.zeros((B,), jnp.float32)
    params = init_params(kp, C, H, DEPTH)

    fwd = jax.jit(glow_mt_forward)
    z, obj = fwd(x, objective, params)
    jax.block_until_ready((z, obj))
    assert z.shape == (B, C, T) and obj.shape == (B,)
    assert bool(jnp.all(jnp.isfinite(z))) and bool(jnp.all(jnp.isfinite(obj)))
    print("KERNEL_OK")
</pallas_src>

<mosaic_0001>
module attributes {stable_mosaic.version = 11 : i64} {
  func.func @_glow_fused_kernel(%arg0: memref<8x256xf32, #tpu.memory_space<vmem>>, %arg1: memref<2x8x8xf32, #tpu.memory_space<vmem>>, %arg2: memref<2x64x12xf32, #tpu.memory_space<vmem>>, %arg3: memref<2x64x1xf32, #tpu.memory_space<vmem>>, %arg4: memref<2x64x64xf32, #tpu.memory_space<vmem>>, %arg5: memref<2x64x1xf32, #tpu.memory_space<vmem>>, %arg6: memref<2x8x192xf32, #tpu.memory_space<vmem>>, %arg7: memref<2x8x1xf32, #tpu.memory_space<vmem>>, %arg8: memref<8x256xf32, #tpu.memory_space<vmem>>, %arg9: memref<1x256xf32, #tpu.memory_space<vmem>>) attributes {dimension_semantics = [], scalar_prefetch = 0 : i64, scratch_operands = 0 : i64, tpu.core_type = #tpu.core_type<tc>} {
    %0 = tpu.iota {dimensions = array<i32: 1>} : vector<4x256xi32>
    %c128_i32 = arith.constant 128 : i32
    %c0_i32 = arith.constant 0 : i32
    %1 = arith.cmpi eq, %c128_i32, %c0_i32 : i32
    %c1_i32 = arith.constant 1 : i32
    %2 = arith.select %1, %c1_i32, %c128_i32 : i32
    %3 = vector.broadcast %2 : i32 to vector<4x256xi32>
    %4 = arith.remsi %0, %3 : vector<4x256xi32>
    %c0_i32_0 = arith.constant 0 : i32
    %5 = vector.broadcast %c0_i32_0 : i32 to vector<4x256xi32>
    %6 = arith.cmpi ne, %4, %5 : vector<4x256xi32>
    %c0_i32_1 = arith.constant 0 : i32
    %7 = vector.broadcast %c0_i32_1 : i32 to vector<4x256xi32>
    %8 = arith.cmpi slt, %4, %7 : vector<4x256xi32>
    %c0_i32_2 = arith.constant 0 : i32
    %9 = arith.cmpi slt, %2, %c0_i32_2 : i32
    %10 = vector.broadcast %9 : i1 to vector<4x256xi1>
    %11 = vector.broadcast %10 : vector<4x256xi1> to vector<4x256xi1>
    %12 = arith.xori %8, %11 : vector<4x256xi1>
    %13 = arith.andi %12, %6 : vector<4x256xi1>
    %14 = vector.broadcast %2 : i32 to vector<4x256xi32>
    %15 = arith.addi %4, %14 : vector<4x256xi32>
    %16 = arith.select %13, %15, %4 : vector<4x256xi1>, vector<4x256xi32>
    %c0_i32_3 = arith.constant 0 : i32
    %17 = vector.broadcast %c0_i32_3 : i32 to vector<4x256xi32>
    %18 = arith.cmpi eq, %16, %17 : vector<4x256xi32>
    %c127_i32 = arith.constant 127 : i32
    %19 = vector.broadcast %c127_i32 : i32 to vector<4x256xi32>
    %20 = arith.cmpi eq, %16, %19 : vector<4x256xi32>
    %21 = tpu.iota {dimensions = array<i32: 1>} : vector<64x256xi32>
    %c128_i32_4 = arith.constant 128 : i32
    %c0_i32_5 = arith.constant 0 : i32
    %22 = arith.cmpi eq, %c128_i32_4, %c0_i32_5 : i32
    %c1_i32_6 = arith.constant 1 : i32
    %23 = arith.select %22, %c1_i32_6, %c128_i32_4 : i32
    %24 = vector.broadcast %23 : i32 to vector<64x256xi32>
    %25 = arith.remsi %21, %24 : vector<64x256xi32>
    %c0_i32_7 = arith.constant 0 : i32
    %26 = vector.broadcast %c0_i32_7 : i32 to vector<64x256xi32>
    %27 = arith.cmpi ne, %25, %26 : vector<64x256xi32>
    %c0_i32_8 = arith.constant 0 : i32
    %28 = vector.broadcast %c0_i32_8 : i32 to vector<64x256xi32>
    %29 = arith.cmpi slt, %25, %28 : vector<64x256xi32>
    %c0_i32_9 = arith.constant 0 : i32
    %30 = arith.cmpi slt, %23, %c0_i32_9 : i32
    %31 = vector.broadcast %30 : i1 to vector<64x256xi1>
    %32 = vector.broadcast %31 : vector<64x256xi1> to vector<64x256xi1>
    %33 = arith.xori %29, %32 : vector<64x256xi1>
    %34 = arith.andi %33, %27 : vector<64x256xi1>
    %35 = vector.broadcast %23 : i32 to vector<64x256xi32>
    %36 = arith.addi %25, %35 : vector<64x256xi32>
    %37 = arith.select %34, %36, %25 : vector<64x256xi1>, vector<64x256xi32>
    %c0_i32_10 = arith.constant 0 : i32
    %38 = vector.broadcast %c0_i32_10 : i32 to vector<64x256xi32>
    %39 = arith.cmpi eq, %37, %38 : vector<64x256xi32>
    %c127_i32_11 = arith.constant 127 : i32
    %40 = vector.broadcast %c127_i32_11 : i32 to vector<64x256xi32>
    %41 = arith.cmpi eq, %37, %40 : vector<64x256xi32>
    %c0 = arith.constant 0 : index
    %c0_12 = arith.constant 0 : index
    %42 = vector.load %arg0[%c0, %c0_12] : memref<8x256xf32, #tpu.memory_space<vmem>>, vector<8x256xf32>
    %cst = arith.constant 0.000000e+00 : f32
    %43 = vector.broadcast %cst : f32 to vector<1x256xf32>
    %cst_13 = arith.constant dense<0.000000e+00> : vector<8xf32>
    %44 = vector.multi_reduction <add>, %42, %cst_13 [1] : vector<8x256xf32> to vector<8xf32>
    %45 = vector.shape_cast %44 : vector<8xf32> to vector<8x1xf32>
    %cst_14 = arith.constant 3.906250e-03 : f32
    %46 = vector.broadcast %cst_14 : f32 to vector<8x1xf32>
    %47 = arith.mulf %45, %46 : vector<8x1xf32>
    %cst_15 = arith.constant 0.000000e+00 : f32
    %48 = vector.broadcast %cst_15 : f32 to vector<8x1xf32>
    %49 = arith.subf %48, %47 : vector<8x1xf32>
    %50 = vector.broadcast %49 : vector<8x1xf32> to vector<8x256xf32>
    %51 = arith.subf %42, %50 : vector<8x256xf32>
    %52 = arith.mulf %51, %51 : vector<8x256xf32>
    %cst_16 = arith.constant dense<0.000000e+00> : vector<8xf32>
    %53 = vector.multi_reduction <add>, %52, %cst_16 [1] : vector<8x256xf32> to vector<8xf32>
    %54 = vector.shape_cast %53 : vector<8xf32> to vector<8x1xf32>
    %cst_17 = arith.constant 3.906250e-03 : f32
    %55 = vector.broadcast %cst_17 : f32 to vector<8x1xf32>
    %56 = arith.mulf %54, %55 : vector<8x1xf32>
    %57 = math.sqrt %56 : vector<8x1xf32>
    %cst_18 = arith.constant 1.000000e+00 : f32
    %58 = vector.broadcast %cst_18 : f32 to vector<8x1xf32>
    %59 = arith.divf %58, %57 : vector<8x1xf32>
    %cst_19 = arith.constant 9.99999997E-7 : f32
    %60 = vector.broadcast %cst_19 : f32 to vector<8x1xf32>
    %61 = arith.addf %59, %60 : vector<8x1xf32>
    %62 = math.log %61 : vector<8x1xf32>
    %63 = vector.shape_cast %62 : vector<8x1xf32> to vector<1x8x1xf32>
    %cst_20 = arith.constant dense<0.000000e+00> : vector<1xf32>
    %64 = vector.multi_reduction <add>, %63, %cst_20 [1, 2] : vector<1x8x1xf32> to vector<1xf32>
    %65 = vector.shape_cast %64 : vector<1xf32> to vector<1x1x1xf32>
    %66 = vector.extract %65[0, 0, 0] : f32 from vector<1x1x1xf32>
    %67 = vector.broadcast %66 : f32 to vector<1x256xf32>
    %68 = arith.addf %43, %67 : vector<1x256xf32>
    %69 = vector.broadcast %49 : vector<8x1xf32> to vector<8x256xf32>
    %70 = arith.addf %42, %69 : vector<8x256xf32>
    %71 = math.exp %62 : vector<8x1xf32>
    %72 = vector.broadcast %71 : vector<8x1xf32> to vector<8x256xf32>
    %73 = arith.mulf %70, %72 : vector<8x256xf32>
    %c0_21 = arith.constant 0 : index
    %c0_22 = arith.constant 0 : index
    %c0_23 = arith.constant 0 : index
    %74 = vector.load %arg1[%c0_21, %c0_22, %c0_23] : memref<2x8x8xf32, #tpu.memory_space<vmem>>, vector<1x8x8xf32>
    %75 = vector.shape_cast %74 : vector<1x8x8xf32> to vector<8x8xf32>
    %cst_24 = arith.constant dense<0.000000e+00> : vector<8x256xf32>
    %76 = tpu.matmul %75, %73, %cst_24 {dimension_numbers = #tpu.dot_dimension_numbers<[1], [0], [0], [1], [0, 0, 1, 1], [], []>} : vector<8x8xf32>, vector<8x256xf32>, vector<8x256xf32> -> vector<8x256xf32>
    %77 = vector.extract_strided_slice %76 {offsets = [0, 0], sizes = [4, 256], strides = [1, 1]} : vector<8x256xf32> to vector<4x256xf32>
    %78 = vector.extract_strided_slice %76 {offsets = [4, 0], sizes = [4, 256], strides = [1, 1]} : vector<8x256xf32> to vector<4x256xf32>
    %c1_i32_25 = arith.constant 1 : i32
    %79 = tpu.dynamic_rotate %77 by %c1_i32_25 dim 1 : vector<4x256xf32>, i32 -> vector<4x256xf32>
    %cst_26 = arith.constant 0.000000e+00 : f32
    %80 = vector.broadcast %cst_26 : f32 to vector<4x256xf32>
    %81 = arith.select %18, %80, %79 : vector<4x256xi1>, vector<4x256xf32>
    %c255_i32 = arith.constant 255 : i32
    %82 = tpu.dynamic_rotate %77 by %c255_i32 dim 1 : vector<4x256xf32>, i32 -> vector<4x256xf32>
    %cst_27 = arith.constant 0.000000e+00 : f32
    %83 = vector.broadcast %cst_27 : f32 to vector<4x256xf32>
    %84 = arith.select %20, %83, %82 : vector<4x256xi1>, vector<4x256xf32>
    %85 = tpu.concatenate %81, %77, %84 in 0 : vector<4x256xf32>, vector<4x256xf32>, vector<4x256xf32> -> vector<12x256xf32>
    %c0_28 = arith.constant 0 : index
    %c0_29 = arith.constant 0 : index
    %c0_30 = arith.constant 0 : index
    %86 = vector.load %arg2[%c0_28, %c0_29, %c0_30] : memref<2x64x12xf32, #tpu.memory_space<vmem>>, vector<1x64x12xf32>
    %87 = vector.shape_cast %86 : vector<1x64x12xf32> to vector<64x12xf32>
    %cst_31 = arith.constant dense<0.000000e+00> : vector<64x256xf32>
    %88 = tpu.matmul %87, %85, %cst_31 {dimension_numbers = #tpu.dot_dimension_numbers<[1], [0], [0], [1], [0, 0, 1, 1], [], []>} : vector<64x12xf32>, vector<12x256xf32>, vector<64x256xf32> -> vector<64x256xf32>
    %c0_32 = arith.constant 0 : index
    %c0_33 = arith.constant 0 : index
    %c0_34 = arith.constant 0 : index
    %89 = vector.load %arg3[%c0_32, %c0_33, %c0_34] : memref<2x64x1xf32, #tpu.memory_space<vmem>>, vector<1x64x1xf32>
    %90 = vector.shape_cast %89 : vector<1x64x1xf32> to vector<64x1xf32>
    %91 = vector.broadcast %90 : vector<64x1xf32> to vector<64x256xf32>
    %92 = arith.addf %88, %91 : vector<64x256xf32>
    %cst_35 = arith.constant 0.000000e+00 : f32
    %93 = vector.broadcast %cst_35 : f32 to vector<64x256xf32>
    %94 = arith.maximumf %92, %93 : vector<64x256xf32>
    %c0_36 = arith.constant 0 : index
    %c0_37 = arith.constant 0 : index
    %c0_38 = arith.constant 0 : index
    %95 = vector.load %arg4[%c0_36, %c0_37, %c0_38] : memref<2x64x64xf32, #tpu.memory_space<vmem>>, vector<1x64x64xf32>
    %96 = vector.shape_cast %95 : vector<1x64x64xf32> to vector<64x64xf32>
    %cst_39 = arith.constant dense<0.000000e+00> : vector<64x256xf32>
    %97 = tpu.matmul %96, %94, %cst_39 {dimension_numbers = #tpu.dot_dimension_numbers<[1], [0], [0], [1], [0, 0, 1, 1], [], []>} : vector<64x64xf32>, vector<64x256xf32>, vector<64x256xf32> -> vector<64x256xf32>
    %c0_40 = arith.constant 0 : index
    %c0_41 = arith.constant 0 : index
    %c0_42 = arith.constant 0 : index
    %98 = vector.load %arg5[%c0_40, %c0_41, %c0_42] : memref<2x64x1xf32, #tpu.memory_space<vmem>>, vector<1x64x1xf32>
    %99 = vector.shape_cast %98 : vector<1x64x1xf32> to vector<64x1xf32>
    %100 = vector.broadcast %99 : vector<64x1xf32> to vector<64x256xf32>
    %101 = arith.addf %97, %100 : vector<64x256xf32>
    %cst_43 = arith.constant 0.000000e+00 : f32
    %102 = vector.broadcast %cst_43 : f32 to vector<64x256xf32>
    %103 = arith.maximumf %101, %102 : vector<64x256xf32>
    %c1_i32_44 = arith.constant 1 : i32
    %104 = tpu.dynamic_rotate %103 by %c1_i32_44 dim 1 : vector<64x256xf32>, i32 -> vector<64x256xf32>
    %cst_45 = arith.constant 0.000000e+00 : f32
    %105 = vector.broadcast %cst_45 : f32 to vector<64x256xf32>
    %106 = arith.select %39, %105, %104 : vector<64x256xi1>, vector<64x256xf32>
    %c255_i32_46 = arith.constant 255 : i32
    %107 = tpu.dynamic_rotate %103 by %c255_i32_46 dim 1 : vector<64x256xf32>, i32 -> vector<64x256xf32>
    %cst_47 = arith.constant 0.000000e+00 : f32
    %108 = vector.broadcast %cst_47 : f32 to vector<64x256xf32>
    %109 = arith.select %41, %108, %107 : vector<64x256xi1>, vector<64x256xf32>
    %110 = tpu.concatenate %106, %103, %109 in 0 : vector<64x256xf32>, vector<64x256xf32>, vector<64x256xf32> -> vector<192x256xf32>
    %c0_48 = arith.constant 0 : index
    %c0_49 = arith.constant 0 : index
    %c0_50 = arith.constant 0 : index
    %111 = vector.load %arg6[%c0_48, %c0_49, %c0_50] : memref<2x8x192xf32, #tpu.memory_space<vmem>>, vector<1x8x192xf32>
    %112 = vector.shape_cast %111 : vector<1x8x192xf32> to vector<8x192xf32>
    %cst_51 = arith.constant dense<0.000000e+00> : vector<8x256xf32>
    %113 = tpu.matmul %112, %110, %cst_51 {dimension_numbers = #tpu.dot_dimension_numbers<[1], [0], [0], [1], [0, 0, 1, 1], [], []>} : vector<8x192xf32>, vector<192x256xf32>, vector<8x256xf32> -> vector<8x256xf32>
    %c0_52 = arith.constant 0 : index
    %c0_53 = arith.constant 0 : index
    %c0_54 = arith.constant 0 : index
    %114 = vector.load %arg7[%c0_52, %c0_53, %c0_54] : memref<2x8x1xf32, #tpu.memory_space<vmem>>, vector<1x8x1xf32>
    %115 = vector.shape_cast %114 : vector<1x8x1xf32> to vector<8x1xf32>
    %116 = vector.broadcast %115 : vector<8x1xf32> to vector<8x256xf32>
    %117 = arith.addf %113, %116 : vector<8x256xf32>
    %118 = vector.extract_strided_slice %117 {offsets = [0, 0], sizes = [4, 256], strides = [1, 1]} : vector<8x256xf32> to vector<4x256xf32>
    %119 = vector.extract_strided_slice %117 {offsets = [4, 0], sizes = [4, 256], strides = [1, 1]} : vector<8x256xf32> to vector<4x256xf32>
    %cst_55 = arith.constant 2.000000e+00 : f32
    %120 = vector.broadcast %cst_55 : f32 to vector<4x256xf32>
    %121 = arith.addf %119, %120 : vector<4x256xf32>
    %122 = arith.negf %121 : vector<4x256xf32>
    %123 = math.exp %122 : vector<4x256xf32>
    %cst_56 = arith.constant 1.000000e+00 : f32
    %124 = vector.broadcast %cst_56 : f32 to vector<4x256xf32>
    %125 = arith.addf %124, %123 : vector<4x256xf32>
    %126 = arith.divf %124, %125 : vector<4x256xf32>
    %127 = arith.addf %78, %118 : vector<4x256xf32>
    %128 = arith.mulf %127, %126 : vector<4x256xf32>
    %129 = math.log %126 : vector<4x256xf32>
    %cst_57 = arith.constant dense<0.000000e+00> : vector<256xf32>
    %130 = vector.multi_reduction <add>, %129, %cst_57 [0] : vector<4x256xf32> to vector<256xf32>
    %131 = vector.shape_cast %130 : vector<256xf32> to vector<1x256xf32>
    %132 = arith.addf %68, %131 : vector<1x256xf32>
    %133 = tpu.concatenate %77, %128 in 0 : vector<4x256xf32>, vector<4x256xf32> -> vector<8x256xf32>
    %cst_58 = arith.constant dense<0.000000e+00> : vector<8xf32>
    %134 = vector.multi_reduction <add>, %133, %cst_58 [1] : vector<8x256xf32> to vector<8xf32>
    %135 = vector.shape_cast %134 : vector<8xf32> to vector<8x1xf32>
    %cst_59 = arith.constant 3.906250e-03 : f32
    %136 = vector.broadcast %cst_59 : f32 to vector<8x1xf32>
    %137 = arith.mulf %135, %136 : vector<8x1xf32>
    %cst_60 = arith.constant 0.000000e+00 : f32
    %138 = vector.broadcast %cst_60 : f32 to vector<8x1xf32>
    %139 = arith.subf %138, %137 : vector<8x1xf32>
    %140 = vector.broadcast %139 : vector<8x1xf32> to vector<8x256xf32>
    %141 = arith.subf %133, %140 : vector<8x256xf32>
    %142 = arith.mulf %141, %141 : vector<8x256xf32>
    %cst_61 = arith.constant dense<0.000000e+00> : vector<8xf32>
    %143 = vector.multi_reduction <add>, %142, %cst_61 [1] : vector<8x256xf32> to vector<8xf32>
    %144 = vector.shape_cast %143 : vector<8xf32> to vector<8x1xf32>
    %cst_62 = arith.constant 3.906250e-03 : f32
    %145 = vector.broadcast %cst_62 : f32 to vector<8x1xf32>
    %146 = arith.mulf %144, %145 : vector<8x1xf32>
    %147 = math.sqrt %146 : vector<8x1xf32>
    %cst_63 = arith.constant 1.000000e+00 : f32
    %148 = vector.broadcast %cst_63 : f32 to vector<8x1xf32>
    %149 = arith.divf %148, %147 : vector<8x1xf32>
    %cst_64 = arith.constant 9.99999997E-7 : f32
    %150 = vector.broadcast %cst_64 : f32 to vector<8x1xf32>
    %151 = arith.addf %149, %150 : vector<8x1xf32>
    %152 = math.log %151 : vector<8x1xf32>
    %153 = vector.shape_cast %152 : vector<8x1xf32> to vector<1x8x1xf32>
    %cst_65 = arith.constant dense<0.000000e+00> : vector<1xf32>
    %154 = vector.multi_reduction <add>, %153, %cst_65 [1, 2] : vector<1x8x1xf32> to vector<1xf32>
    %155 = vector.shape_cast %154 : vector<1xf32> to vector<1x1x1xf32>
    %156 = vector.extract %155[0, 0, 0] : f32 from vector<1x1x1xf32>
    %157 = vector.broadcast %156 : f32 to vector<1x256xf32>
    %158 = arith.addf %132, %157 : vector<1x256xf32>
    %159 = vector.broadcast %139 : vector<8x1xf32> to vector<8x256xf32>
    %160 = arith.addf %133, %159 : vector<8x256xf32>
    %161 = math.exp %152 : vector<8x1xf32>
    %162 = vector.broadcast %161 : vector<8x1xf32> to vector<8x256xf32>
    %163 = arith.mulf %160, %162 : vector<8x256xf32>
    %c1 = arith.constant 1 : index
    %c0_66 = arith.constant 0 : index
    %c0_67 = arith.constant 0 : index
    %164 = vector.load %arg1[%c1, %c0_66, %c0_67] : memref<2x8x8xf32, #tpu.memory_space<vmem>>, vector<1x8x8xf32>
    %165 = vector.shape_cast %164 : vector<1x8x8xf32> to vector<8x8xf32>
    %cst_68 = arith.constant dense<0.000000e+00> : vector<8x256xf32>
    %166 = tpu.matmul %165, %163, %cst_68 {dimension_numbers = #tpu.dot_dimension_numbers<[1], [0], [0], [1], [0, 0, 1, 1], [], []>} : vector<8x8xf32>, vector<8x256xf32>, vector<8x256xf32> -> vector<8x256xf32>
    %167 = vector.extract_strided_slice %166 {offsets = [0, 0], sizes = [4, 256], strides = [1, 1]} : vector<8x256xf32> to vector<4x256xf32>
    %168 = vector.extract_strided_slice %166 {offsets = [4, 0], sizes = [4, 256], strides = [1, 1]} : vector<8x256xf32> to vector<4x256xf32>
    %c1_i32_69 = arith.constant 1 : i32
    %169 = tpu.dynamic_rotate %167 by %c1_i32_69 dim 1 : vector<4x256xf32>, i32 -> vector<4x256xf32>
    %cst_70 = arith.constant 0.000000e+00 : f32
    %170 = vector.broadcast %cst_70 : f32 to vector<4x256xf32>
    %171 = arith.select %18, %170, %169 : vector<4x256xi1>, vector<4x256xf32>
    %c255_i32_71 = arith.constant 255 : i32
    %172 = tpu.dynamic_rotate %167 by %c255_i32_71 dim 1 : vector<4x256xf32>, i32 -> vector<4x256xf32>
    %cst_72 = arith.constant 0.000000e+00 : f32
    %173 = vector.broadcast %cst_72 : f32 to vector<4x256xf32>
    %174 = arith.select %20, %173, %172 : vector<4x256xi1>, vector<4x256xf32>
    %175 = tpu.concatenate %171, %167, %174 in 0 : vector<4x256xf32>, vector<4x256xf32>, vector<4x256xf32> -> vector<12x256xf32>
    %c1_73 = arith.constant 1 : index
    %c0_74 = arith.constant 0 : index
    %c0_75 = arith.constant 0 : index
    %176 = vector.load %arg2[%c1_73, %c0_74, %c0_75] : memref<2x64x12xf32, #tpu.memory_space<vmem>>, vector<1x64x12xf32>
    %177 = vector.shape_cast %176 : vector<1x64x12xf32> to vector<64x12xf32>
    %cst_76 = arith.constant dense<0.000000e+00> : vector<64x256xf32>
    %178 = tpu.matmul %177, %175, %cst_76 {dimension_numbers = #tpu.dot_dimension_numbers<[1], [0], [0], [1], [0, 0, 1, 1], [], []>} : vector<64x12xf32>, vector<12x256xf32>, vector<64x256xf32> -> vector<64x256xf32>
    %c1_77 = arith.constant 1 : index
    %c0_78 = arith.constant 0 : index
    %c0_79 = arith.constant 0 : index
    %179 = vector.load %arg3[%c1_77, %c0_78, %c0_79] : memref<2x64x1xf32, #tpu.memory_space<vmem>>, vector<1x64x1xf32>
    %180 = vector.shape_cast %179 : vector<1x64x1xf32> to vector<64x1xf32>
    %181 = vector.broadcast %180 : vector<64x1xf32> to vector<64x256xf32>
    %182 = arith.addf %178, %181 : vector<64x256xf32>
    %cst_80 = arith.constant 0.000000e+00 : f32
    %183 = vector.broadcast %cst_80 : f32 to vector<64x256xf32>
    %184 = arith.maximumf %182, %183 : vector<64x256xf32>
    %c1_81 = arith.constant 1 : index
    %c0_82 = arith.constant 0 : index
    %c0_83 = arith.constant 0 : index
    %185 = vector.load %arg4[%c1_81, %c0_82, %c0_83] : memref<2x64x64xf32, #tpu.memory_space<vmem>>, vector<1x64x64xf32>
    %186 = vector.shape_cast %185 : vector<1x64x64xf32> to vector<64x64xf32>
    %cst_84 = arith.constant dense<0.000000e+00> : vector<64x256xf32>
    %187 = tpu.matmul %186, %184, %cst_84 {dimension_numbers = #tpu.dot_dimension_numbers<[1], [0], [0], [1], [0, 0, 1, 1], [], []>} : vector<64x64xf32>, vector<64x256xf32>, vector<64x256xf32> -> vector<64x256xf32>
    %c1_85 = arith.constant 1 : index
    %c0_86 = arith.constant 0 : index
    %c0_87 = arith.constant 0 : index
    %188 = vector.load %arg5[%c1_85, %c0_86, %c0_87] : memref<2x64x1xf32, #tpu.memory_space<vmem>>, vector<1x64x1xf32>
    %189 = vector.shape_cast %188 : vector<1x64x1xf32> to vector<64x1xf32>
    %190 = vector.broadcast %189 : vector<64x1xf32> to vector<64x256xf32>
    %191 = arith.addf %187, %190 : vector<64x256xf32>
    %cst_88 = arith.constant 0.000000e+00 : f32
    %192 = vector.broadcast %cst_88 : f32 to vector<64x256xf32>
    %193 = arith.maximumf %191, %192 : vector<64x256xf32>
    %c1_i32_89 = arith.constant 1 : i32
    %194 = tpu.dynamic_rotate %193 by %c1_i32_89 dim 1 : vector<64x256xf32>, i32 -> vector<64x256xf32>
    %cst_90 = arith.constant 0.000000e+00 : f32
    %195 = vector.broadcast %cst_90 : f32 to vector<64x256xf32>
    %196 = arith.select %39, %195, %194 : vector<64x256xi1>, vector<64x256xf32>
    %c255_i32_91 = arith.constant 255 : i32
    %197 = tpu.dynamic_rotate %193 by %c255_i32_91 dim 1 : vector<64x256xf32>, i32 -> vector<64x256xf32>
    %cst_92 = arith.constant 0.000000e+00 : f32
    %198 = vector.broadcast %cst_92 : f32 to vector<64x256xf32>
    %199 = arith.select %41, %198, %197 : vector<64x256xi1>, vector<64x256xf32>
    %200 = tpu.concatenate %196, %193, %199 in 0 : vector<64x256xf32>, vector<64x256xf32>, vector<64x256xf32> -> vector<192x256xf32>
    %c1_93 = arith.constant 1 : index
    %c0_94 = arith.constant 0 : index
    %c0_95 = arith.constant 0 : index
    %201 = vector.load %arg6[%c1_93, %c0_94, %c0_95] : memref<2x8x192xf32, #tpu.memory_space<vmem>>, vector<1x8x192xf32>
    %202 = vector.shape_cast %201 : vector<1x8x192xf32> to vector<8x192xf32>
    %cst_96 = arith.constant dense<0.000000e+00> : vector<8x256xf32>
    %203 = tpu.matmul %202, %200, %cst_96 {dimension_numbers = #tpu.dot_dimension_numbers<[1], [0], [0], [1], [0, 0, 1, 1], [], []>} : vector<8x192xf32>, vector<192x256xf32>, vector<8x256xf32> -> vector<8x256xf32>
    %c1_97 = arith.constant 1 : index
    %c0_98 = arith.constant 0 : index
    %c0_99 = arith.constant 0 : index
    %204 = vector.load %arg7[%c1_97, %c0_98, %c0_99] : memref<2x8x1xf32, #tpu.memory_space<vmem>>, vector<1x8x1xf32>
    %205 = vector.shape_cast %204 : vector<1x8x1xf32> to vector<8x1xf32>
    %206 = vector.broadcast %205 : vector<8x1xf32> to vector<8x256xf32>
    %207 = arith.addf %203, %206 : vector<8x256xf32>
    %208 = vector.extract_strided_slice %207 {offsets = [0, 0], sizes = [4, 256], strides = [1, 1]} : vector<8x256xf32> to vector<4x256xf32>
    %209 = vector.extract_strided_slice %207 {offsets = [4, 0], sizes = [4, 256], strides = [1, 1]} : vector<8x256xf32> to vector<4x256xf32>
    %cst_100 = arith.constant 2.000000e+00 : f32
    %210 = vector.broadcast %cst_100 : f32 to vector<4x256xf32>
    %211 = arith.addf %209, %210 : vector<4x256xf32>
    %212 = arith.negf %211 : vector<4x256xf32>
    %213 = math.exp %212 : vector<4x256xf32>
    %cst_101 = arith.constant 1.000000e+00 : f32
    %214 = vector.broadcast %cst_101 : f32 to vector<4x256xf32>
    %215 = arith.addf %214, %213 : vector<4x256xf32>
    %216 = arith.divf %214, %215 : vector<4x256xf32>
    %217 = arith.addf %168, %208 : vector<4x256xf32>
    %218 = arith.mulf %217, %216 : vector<4x256xf32>
    %219 = math.log %216 : vector<4x256xf32>
    %cst_102 = arith.constant dense<0.000000e+00> : vector<256xf32>
    %220 = vector.multi_reduction <add>, %219, %cst_102 [0] : vector<4x256xf32> to vector<256xf32>
    %221 = vector.shape_cast %220 : vector<256xf32> to vector<1x256xf32>
    %222 = arith.addf %158, %221 : vector<1x256xf32>
    %223 = arith.mulf %167, %167 : vector<4x256xf32>
    %cst_103 = arith.constant 1.83787704 : f32
    %224 = vector.broadcast %cst_103 : f32 to vector<4x256xf32>
    %225 = arith.addf %224, %223 : vector<4x256xf32>
    %cst_104 = arith.constant -5.000000e-01 : f32
    %226 = vector.broadcast %cst_104 : f32 to vector<4x256xf32>
    %227 = arith.mulf %226, %225 : vector<4x256xf32>
    %cst_105 = arith.constant dense<0.000000e+00> : vector<256xf32>
    %228 = vector.multi_reduction <add>, %227, %cst_105 [0] : vector<4x256xf32> to vector<256xf32>
    %229 = vector.shape_cast %228 : vector<256xf32> to vector<1x256xf32>
    %230 = arith.addf %222, %229 : vector<1x256xf32>
    %231 = arith.mulf %218, %218 : vector<4x256xf32>
    %cst_106 = arith.constant 1.83787704 : f32
    %232 = vector.broadcast %cst_106 : f32 to vector<4x256xf32>
    %233 = arith.addf %232, %231 : vector<4x256xf32>
    %cst_107 = arith.constant -5.000000e-01 : f32
    %234 = vector.broadcast %cst_107 : f32 to vector<4x256xf32>
    %235 = arith.mulf %234, %233 : vector<4x256xf32>
    %cst_108 = arith.constant dense<0.000000e+00> : vector<256xf32>
    %236 = vector.multi_reduction <add>, %235, %cst_108 [0] : vector<4x256xf32> to vector<256xf32>
    %237 = vector.shape_cast %236 : vector<256xf32> to vector<1x256xf32>
    %238 = arith.addf %230, %237 : vector<1x256xf32>
    %c0_109 = arith.constant 0 : index
    %c0_110 = arith.constant 0 : index
    %239 = vector.load %arg8[%c0_109, %c0_110] : memref<8x256xf32, #tpu.memory_space<vmem>>, vector<4x256xf32>
    tpu.vector_store %arg8[%c0_109, %c0_110], %167 {strides = array<i32>} : memref<8x256xf32, #tpu.memory_space<vmem>>, vector<4x256xf32>,
    %c4 = arith.constant 4 : index
    %c0_111 = arith.constant 0 : index
    %240 = vector.load %arg8[%c4, %c0_111] : memref<8x256xf32, #tpu.memory_space<vmem>>, vector<4x256xf32>
    tpu.vector_store %arg8[%c4, %c0_111], %218 {strides = array<i32>} : memref<8x256xf32, #tpu.memory_space<vmem>>, vector<4x256xf32>,
    %c0_112 = arith.constant 0 : index
    %c0_113 = arith.constant 0 : index
    %241 = vector.load %arg9[%c0_112, %c0_113] : memref<1x256xf32, #tpu.memory_space<vmem>>, vector<1x256xf32>
    tpu.vector_store %arg9[%c0_112, %c0_113], %238 {strides = array<i32>} : memref<1x256xf32, #tpu.memory_space<vmem>>, vector<1x256xf32>,
    return
  }
}

</mosaic_0001>

<bundles_post_ra>
// kernel: glow_mt_forward.1
= control target key start
LH: loop header
LB: loop body
LE: loop exit
PB: predicated region body
PF: predicated region fallthrough
CT: control target
= control target key end

     0   :  { %s3251_s0 = inlined_call_operand.vmem [shape: f32[8,256], index: 0, kind: input, shape index: {}]   ;;  %s3252_s1 = inlined_call_operand.vmem [shape: f32[2,8,8], index: 1, kind: input, shape index: {}]   ;;  %s3253_s2 = inlined_call_operand.vmem [shape: f32[2,64,12], index: 2, kind: input, shape index: {}]   ;;  %s3254_s3 = inlined_call_operand.vmem [shape: f32[2,64,1], index: 3, kind: input, shape index: {}]   ;;  %s3255_s4 = inlined_call_operand.vmem [shape: f32[2,64,64], index: 4, kind: input, shape index: {}]   ;;  %s3256_s5 = inlined_call_operand.vmem [shape: f32[2,64,1], index: 5, kind: input, shape index: {}]   ;;  %s3257_s6 = inlined_call_operand.vmem [shape: f32[2,8,192], index: 6, kind: input, shape index: {}]   ;;  %s3258_s7 = inlined_call_operand.vmem [shape: f32[2,8,1], index: 7, kind: input, shape index: {}]   ;;  %s3259_s8 = inlined_call_operand.hbm [shape: f32[8,256], index: 8, kind: output, shape index: {0}]   ;;  %s3260_s9 = inlined_call_operand.vmem [shape: f32[1,256], index: 9, kind: output, shape index: {1}]  }
   0x1   :  { %v63_v0 = vld [vmem:[%s3251_s0] sm:$0xff]  ;;  %v64_v1 = vld [vmem:[%s3251_s0 + $0x8] sm:$0xff] }
   0x2   :  { %15 = vsyncpa [#allocation3], 0  ;;  %v65_v2 = vadd.f32 %v64_v1, %v63_v0  ;;  %v2466_v11 = vmov 0.0   ;;  %v109_v29 = vld [vmem:[%s3252_s1] sm:$0xff]  ;;  %vm110_vm2 = vcmask 64512   ;;  %s2467_s14 = smov 1   ;;  %v32_v50 = vlaneseq }
   0x3   :  { %178 = vmatprep.mubr.f32.mxu1 %v2466_v11  ;;  %573 = vmatprep.mubr.f32.mxu0 %v2466_v11  ;;  %s2468_s15 = smov 127   ;;  %v221_v33 = vld [vmem:[%s3254_s3 + $0x8] sm:$0xff]  ;;  %v2469_v34 = vmov 0   ;;  %v222_v35 = vld [vmem:[%s3254_s3 + $0x10] sm:$0xff]  ;;  %v220_v36 = vld [vmem:[%s3254_s3] sm:$0xff]  ;;  %vm209_vm7 = vcmask 1043456  }
   0x4   :  { %66 = vadd.xlane.f32.xlu0 %v65_v2  ;;  %2231 = vset.pattern.permute.xlu1 %v2469_v34  ;;  %v440_v37 = vld [vmem:[%s3256_s5 + $0x20] sm:$0xff]  ;;  %v223_v38 = vld [vmem:[%s3254_s3 + $0x18] sm:$0xff]  ;;  %v442_v39 = vld [vmem:[%s3256_s5 + $0x30] sm:$0xff]  ;;  %v2596_v51 = vand.u32 127, %v32_v50  ;;  %vm2470_vm10 = vmmov 1   ;;  %vm268_vm12 = vcmask 97280  }
   0x5   :  { %2230 = vset.pattern.permute.xlu0 %v2469_v34  ;;  %v224_v40 = vld [vmem:[%s3254_s3 + $0x20] sm:$0xff]  ;;  %v225_v41 = vld [vmem:[%s3254_s3 + $0x28] sm:$0xff]  ;;  %v226_v42 = vld [vmem:[%s3254_s3 + $0x30] sm:$0xff]  ;;  %vm3261_vm13 = vcmask 523264  }
   0x6   :  { %v227_v43 = vld [vmem:[%s3254_s3 + $0x38] sm:$0xff]  ;;  %v436_v44 = vld [vmem:[%s3256_s5] sm:$0xff]  ;;  %v437_v45 = vld [vmem:[%s3256_s5 + $0x8] sm:$0xff]  ;;  %v34_v52 = vadd.s32 128, %v2596_v51  ;;  %vm189_vm3 = vcmp.lt.s32.totalorder %v2596_v51, 1  ;;  %vm59_vm4 = vcmp.eq.s32.totalorder %v2596_v51, 0 }
   0x7   :  { %v438_v46 = vld [vmem:[%s3256_s5 + $0x10] sm:$0xff]  ;;  %v439_v47 = vld [vmem:[%s3256_s5 + $0x18] sm:$0xff]  ;;  %v441_v48 = vld [vmem:[%s3256_s5 + $0x28] sm:$0xff]  ;;  %vm198_vm6 = vcmp.lt.s32.totalorder %v2596_v51, 127  ;;  %vm61_vm8 = vcmp.eq.s32.totalorder %v2596_v51, 127 }
   0x8   :  { %v443_v49 = vld [vmem:[%s3256_s5 + $0x38] sm:$0xff]  ;;  %v46_v53 = vand.u32 127, %v34_v52  ;;  %vm2632_vm11 = vmpackc.low %vm209_vm7, %vm2470_vm10  ;;  %v1917_v57 = vld [vmem:[%s3253_s2 + $0x40] sm:$0xff] }
   0x9   :  { %vm1850_vm15 = vmneg %vm59_vm4  ;;  %v1918_v61 = vld [vmem:[%s3253_s2 + $0x48] sm:$0xff] }
   0xa   :  { %vm2601_vm5 = vcmp.eq.s32.totalorder %v46_v53, 0  ;;  %vm2611_vm9 = vcmp.eq.s32.totalorder %v46_v53, 127 }
   0xb   :  { %vm1848_vm14 = vmneg %vm2601_vm5 }
   0xc   :  { %vm1880_vm10 = vmneg %vm2611_vm9 }
  0x91   :  { %v67_v3 = vpop.xlane.xlu0 %66 }
  0x92   :  { %v68_v4 = vmul.f32 0.00390625, %v67_v3 }
  0x94   :  { %v69_v5 = vsub.f32 0.0, %v68_v4 }
  0x96   :  { %v70_v6 = vsub.f32 %v63_v0, %v69_v5  ;;  %v71_v7 = vsub.f32 %v64_v1, %v69_v5  ;;  %v104_v24 = vadd.f32 %v69_v5, %v64_v1  ;;  %v103_v25 = vadd.f32 %v69_v5, %v63_v0 }
  0x98   :  { %v72_v8 = vmul.f32 %v70_v6, %v70_v6  ;;  %v73_v9 = vmul.f32 %v71_v7, %v71_v7 }
  0x9a   :  { %v74_v10 = vadd.f32 %v73_v9, %v72_v8 }
  0x9c   :  { %75 = vadd.xlane.f32.xlu0 %v74_v10  ;;  %v1919_v10 = vld [vmem:[%s3253_s2 + $0x50] sm:$0xff] }
  0xb2   :  { %230 = vperm.xlu0 %2230, %v220_v36  }
  0xb6   :  { %466 = vperm.xlu0 %2230, %v440_v37  }
  0xba   :  { %476 = vperm.xlu0 %2230, %v442_v39  }
 0x129   :  { %v76_v12 = vpop.xlane.xlu0 %75 }
 0x12a   :  { %v77_v13 = vmul.f32 0.00390625, %v76_v12 }
 0x12c   :  { %2402 = vrsqrt.f32 %v77_v13  ;;  %vm80_vm0 = vcmp.eq.f32.partialorder %v77_v13, inf  ;;  %v83_v16 = vand.u32 2147483648, %v77_v13  ;;  %vm82_vm1 = vcmp.eq.f32.partialorder %v77_v13, 0.0 }
 0x136   :  { %v2403_v14 = vpop.eup %2402 }
 0x137   :  { %v79_v15 = vmul.f32 %v2403_v14, %v77_v13  ;;  %v212_v14 = vld [vmem:[%s3253_s2] sm:$0xff] }
 0x139   :  { %v81_v17 = vsel %vm80_vm0, %v77_v13, %v79_v15  ;;  %v213_v15 = vld [vmem:[%s3253_s2 + $0x8] sm:$0xff]  ;;  %vm2762_vm0 = vmpackc.low %vm1848_vm14, %vm1848_vm14 }
 0x13a   :  { %v84_v18 = vsel %vm82_vm1, %v83_v16, %v81_v17  ;;  %v214_v16 = vld [vmem:[%s3253_s2 + $0x10] sm:$0xff]  ;;  %v215_v17 = vld [vmem:[%s3253_s2 + $0x18] sm:$0xff]  ;;  %vm2774_vm1 = vmpackc.low %vm1850_vm15, %vm1850_vm15 }
 0x13b   :  { %2404 = vrcp.f32 %v84_v18  ;;  %v216_v18 = vld [vmem:[%s3253_s2 + $0x20] sm:$0xff]  ;;  %vm1882_vm14 = vmneg %vm61_vm8 }
 0x13c   :  { %vm2833_vm15 = vmpackc.low %vm1880_vm10, %vm1880_vm10 }
 0x13d   :  { %vm2846_vm10 = vmpackc.low %vm1882_vm14, %vm1882_vm14 }
 0x145   :  { %v2405_v19 = vpop.eup %2404 }
 0x146   :  { %v87_v20 = vadd.f32 1e-06, %v2405_v19  ;;  %v217_v19 = vld [vmem:[%s3253_s2 + $0x28] sm:$0xff] }
 0x148   :  { %2406 = vlog2.f32 %v87_v20  ;;  %v218_v20 = vld [vmem:[%s3253_s2 + $0x30] sm:$0xff] }
 0x152   :  { %v2407_v21 = vpop.eup %2406 }
 0x153   :  { %v2531_v22 = vmul.f32 0.6931472, %v2407_v21  ;;  %v219_v21 = vld [vmem:[%s3253_s2 + $0x38] sm:$0xff] }
 0x155   :  { %v105_v23 = vmul.f32 1.442695, %v2531_v22 }
 0x157   :  { %2408 = vpow2.f32 %v105_v23 }
 0x161   :  { %v2409_v26 = vpop.eup %2408 }
 0x162   :  { %v108_v27 = vmul.f32 %v2409_v26, %v104_v24  ;;  %v107_v28 = vmul.f32 %v2409_v26, %v103_v25  ;;  %v231_v25 = vpop.permute.xlu0 %230 }
 0x164   :  { %114 = vmatprep.subr.mxu1 %v108_v27 }
 0x165   :  { %115 = vmatpush1.msra.mxu1 %v107_v28 }
 0x166   :  { %1829 = vmatmul.mubr.msk.f32.vlgmr.msra.gmra.mrb[0].mxu1 %vm110_vm2, %v109_v29 }
 0x167   :  { %363 = vmatprep.mubr.f32.mxu1 %v2466_v11 }
 0x239   :  { %v2539_v30 = vpop.f32.mrb[0].mxu1 }
 0x23a   :  { %v2541_v31 = vpop.f32.mrb[1].mxu1  ;;  %v205_v2 = vrot.slane %v2539_v30, 4 }
 0x23b   :  { %v2220_v32 = vpack.i.bf16 %v2541_v31, %v2539_v30  ;;  %v206_v3 = vrot.slane %v2541_v31, 4 }
 0x23d   :  { %2221 = vrot.lane.b32.xlu1 %v2220_v32, %s2467_s14 }
 0x241   :  { %2226 = vrot.lane.b32.xlu1 %v2220_v32, %s2468_s15 }
 0x245   :  { %235 = vperm.xlu1 %2231, %v221_v33  }
 0x249   :  { %240 = vperm.xlu1 %2231, %v222_v35  }
 0x24d   :  { %245 = vperm.xlu1 %2231, %v223_v38  }
 0x251   :  { %250 = vperm.xlu1 %2231, %v224_v40  }
 0x255   :  { %255 = vperm.xlu1 %2231, %v225_v41  }
 0x259   :  { %260 = vperm.xlu1 %2231, %v226_v42  }
 0x25d   :  { %265 = vperm.xlu1 %2231, %v227_v43  }
 0x261   :  { %446 = vperm.xlu1 %2231, %v436_v44  }
 0x265   :  { %451 = vperm.xlu1 %2231, %v437_v45  }
 0x269   :  { %456 = vperm.xlu1 %2231, %v438_v46  }
 0x26d   :  { %461 = vperm.xlu1 %2231, %v439_v47  }
 0x271   :  { %471 = vperm.xlu1 %2231, %v441_v48  }
 0x275   :  { %481 = vperm.xlu1 %2231, %v443_v49  }
 0x2af   :  { %v2222_v54 = vpop.permute.xlu1 %2221 }
 0x2b0   :  { %v2224_v55 = vunpack.i.h.bf16 %v2222_v54  ;;  %v2223_v56 = vunpack.i.l.bf16 %v2222_v54 }
 0x2b2   :  { %v190_v58 = vsel %vm189_vm3, %v2223_v56, %v2224_v55  ;;  %v191_v59 = vsel %vm189_vm3, %v2224_v55, %v2223_v56 }
 0x2b3   :  { %v2227_v60 = vpop.permute.xlu1 %2226  ;;  %v192_v62 = vsel %vm59_vm4, 0.0, %v191_v59  ;;  %v193_v63 = vsel %vm2601_vm5, 0.0, %v190_v58 }
 0x2b4   :  { %v2229_v0 = vunpack.i.h.bf16 %v2227_v60  ;;  %v2228_v1 = vunpack.i.l.bf16 %v2227_v60  ;;  %v210_v8 = vsel %vm209_vm7, %v192_v62, %v205_v2  ;;  %v211_v9 = vsel %vm209_vm7, %v193_v63, %v206_v3 }
 0x2b6   :  { %v199_v4 = vsel %vm198_vm6, %v2228_v1, %v2229_v0  ;;  %v200_v5 = vsel %vm198_vm6, %v2229_v0, %v2228_v1 }
 0x2b7   :  { %v201_v6 = vsel %vm61_vm8, 0.0, %v199_v4  ;;  %v202_v7 = vsel %vm2611_vm9, 0.0, %v200_v5 }
 0x2b8   :  { %v2040_v12 = vpack.c.bf16 %v201_v6, %v210_v8  ;;  %v2037_v13 = vpack.c.bf16 %v202_v7, %v211_v9 }
 0x2ba   :  { %2039 = vmatprep.subr.msk.bf16.mxu1 %vm2632_vm11, %v2037_v13 }
 0x2bb   :  { %2042 = vmatpush1.bf16.msk.msra.mxu1 %vm2632_vm11, %v2040_v12 }
 0x2be   :  { %1832 = vmatmul.mubr.msk.f32.vlgmr.msra.gmra.mrb[2].mxu1 %vm268_vm12, %v212_v14 }
 0x2bf   :  { %369 = vmatprep.mubr.f32.mxu1 %v2466_v11 }
 0x2c2   :  { %1833 = vmatmul.mubr.msk.f32.gmra.mrb[4].mxu1 %vm268_vm12, %v213_v15 }
 0x2c3   :  { %375 = vmatprep.mubr.f32.mxu1 %v2466_v11 }
 0x2c4   :  { %v236_v23 = vpop.permute.xlu1 %235 }
 0x2c6   :  { %1834 = vmatmul.mubr.msk.f32.gmra.mrb[6].mxu1 %vm268_vm12, %v214_v16 }
 0x2c7   :  { %381 = vmatprep.mubr.f32.mxu1 %v2466_v11 }
 0x2c8   :  { %v241_v24 = vpop.permute.xlu1 %240 }
 0x2ca   :  { %1835 = vmatmul.mubr.msk.f32.gmra.mrb[8].mxu1 %vm268_vm12, %v215_v17 }
 0x2cb   :  { %387 = vmatprep.mubr.f32.mxu1 %v2466_v11 }
 0x2cc   :  { %v246_v29 = vpop.permute.xlu1 %245 }
 0x2ce   :  { %1836 = vmatmul.mubr.msk.f32.gmra.mrb[10].mxu1 %vm268_vm12, %v216_v18 }
 0x2cf   :  { %393 = vmatprep.mubr.f32.mxu1 %v2466_v11 }
 0x2d0   :  { %v251_v44 = vpop.permute.xlu1 %250 }
 0x2d2   :  { %1837 = vmatmul.mubr.msk.f32.gmra.mrb[12].mxu1 %vm268_vm12, %v217_v19 }
 0x2d3   :  { %399 = vmatprep.mubr.f32.mxu1 %v2466_v11 }
 0x2d4   :  { %v256_v56 = vpop.permute.xlu1 %255 }
 0x2d6   :  { %1838 = vmatmul.mubr.msk.f32.gmra.mrb[14].mxu1 %vm268_vm12, %v218_v20 }
 0x2d7   :  { %405 = vmatprep.mubr.f32.mxu1 %v2466_v11 }
 0x2d8   :  { %v261_v6 = vpop.permute.xlu1 %260 }
 0x2da   :  { %1839 = vmatmul.mubr.msk.f32.gmra.mrb[16].mxu1 %vm268_vm12, %v219_v21 }
 0x2dc   :  { %v266_v19 = vpop.permute.xlu1 %265 }
 0x391   :  { %v365_v26 = vpop.f32.mrb[2].mxu1 }
 0x392   :  { %v367_v27 = vpop.f32.mrb[3].mxu1  ;;  %v366_v28 = vadd.f32 %v365_v26, %v231_v25 }
 0x393   :  { %v368_v32 = vadd.f32 %v367_v27, %v231_v25 }
 0x394   :  { %v412_v37 = vmax.f32 %v366_v28, 0.0 }
 0x395   :  { %v371_v33 = vpop.f32.mrb[4].mxu1  ;;  %v413_v39 = vmax.f32 %v368_v32, 0.0 }
 0x396   :  { %v372_v34 = vadd.f32 %v371_v33, %v236_v23  ;;  %v373_v35 = vpop.f32.mrb[5].mxu1 }
 0x397   :  { %v374_v36 = vadd.f32 %v373_v35, %v236_v23  ;;  %v429_v35 = vld [vmem:[%s3255_s4 + $0x8] sm:$0xff] }
 0x398   :  { %v414_v38 = vmax.f32 %v372_v34, 0.0  ;;  %v428_v34 = vld [vmem:[%s3255_s4] sm:$0xff] }
 0x399   :  { %v415_v40 = vmax.f32 %v374_v36, 0.0  ;;  %v377_v41 = vpop.f32.mrb[6].mxu1  ;;  %v430_v36 = vld [vmem:[%s3255_s4 + $0x10] sm:$0xff] }
 0x39a   :  { %v379_v42 = vpop.f32.mrb[7].mxu1  ;;  %v2045_v43 = vpack.c.bf16 %v414_v38, %v412_v37  ;;  %v378_v46 = vadd.f32 %v377_v41, %v241_v24  ;;  %v431_v37 = vld [vmem:[%s3255_s4 + $0x18] sm:$0xff]  ;;  %v432_v38 = vld [vmem:[%s3255_s4 + $0x20] sm:$0xff] }
 0x39b   :  { %v2043_v45 = vpack.c.bf16 %v415_v40, %v413_v39  ;;  %v380_v47 = vadd.f32 %v379_v42, %v241_v24  ;;  %v433_v39 = vld [vmem:[%s3255_s4 + $0x28] sm:$0xff]  ;;  %v434_v40 = vld [vmem:[%s3255_s4 + $0x30] sm:$0xff]  ;;  %v435_v41 = vld [vmem:[%s3255_s4 + $0x38] sm:$0xff]  ;;  %v447_v42 = vpop.permute.xlu1 %446 }
 0x39c   :  { %v416_v54 = vmax.f32 %v378_v46, 0.0 }
 0x39d   :  { %v383_v48 = vpop.f32.mrb[8].mxu1  ;;  %2044 = vmatprep.subr.bf16.mxu0 %v2043_v45  ;;  %v417_v58 = vmax.f32 %v380_v47, 0.0 }
 0x39e   :  { %v384_v49 = vadd.f32 %v383_v48, %v246_v29  ;;  %v385_v52 = vpop.f32.mrb[9].mxu1  ;;  %2046 = vmatpush1.bf16.msra.mxu0 %v2045_v43 }
 0x39f   :  { %v386_v53 = vadd.f32 %v385_v52, %v246_v29  ;;  %v452_v43 = vpop.permute.xlu1 %451 }
 0x3a0   :  { %v418_v55 = vmax.f32 %v384_v49, 0.0 }
 0x3a1   :  { %v419_v59 = vmax.f32 %v386_v53, 0.0  ;;  %v389_v60 = vpop.f32.mrb[10].mxu1 }
 0x3a2   :  { %v2049_v62 = vpack.c.bf16 %v418_v55, %v416_v54  ;;  %v391_v63 = vpop.f32.mrb[11].mxu1  ;;  %v390_v1 = vadd.f32 %v389_v60, %v251_v44 }
 0x3a3   :  { %v2047_v0 = vpack.c.bf16 %v419_v59, %v417_v58  ;;  %v392_v2 = vadd.f32 %v391_v63, %v251_v44  ;;  %v457_v53 = vpop.permute.xlu1 %456 }
 0x3a4   :  { %v420_v8 = vmax.f32 %v390_v1, 0.0 }
 0x3a5   :  { %v395_v3 = vpop.f32.mrb[12].mxu1  ;;  %2048 = vmatprep.subr.bf16.mxu0 %v2047_v0  ;;  %v421_v12 = vmax.f32 %v392_v2, 0.0 }
 0x3a6   :  { %v396_v4 = vadd.f32 %v395_v3, %v256_v56  ;;  %v397_v5 = vpop.f32.mrb[13].mxu1  ;;  %2050 = vmatpush1.bf16.msra.mxu0 %v2049_v62 }
 0x3a7   :  { %v398_v7 = vadd.f32 %v397_v5, %v256_v56 }
 0x3a8   :  { %v422_v9 = vmax.f32 %v396_v4, 0.0  ;;  %v462_v4 = vpop.permute.xlu1 %461 }
 0x3a9   :  { %v423_v13 = vmax.f32 %v398_v7, 0.0  ;;  %v401_v14 = vpop.f32.mrb[14].mxu1 }
 0x3aa   :  { %v2053_v15 = vpack.c.bf16 %v422_v9, %v420_v8  ;;  %v403_v16 = vpop.f32.mrb[15].mxu1  ;;  %v402_v18 = vadd.f32 %v401_v14, %v261_v6 }
 0x3ab   :  { %v2051_v17 = vpack.c.bf16 %v423_v13, %v421_v12  ;;  %v404_v20 = vadd.f32 %v403_v16, %v261_v6 }
 0x3ac   :  { %v424_v26 = vmax.f32 %v402_v18, 0.0 }
 0x3ad   :  { %v407_v21 = vpop.f32.mrb[16].mxu1  ;;  %2052 = vmatprep.subr.bf16.mxu0 %v2051_v17  ;;  %v425_v28 = vmax.f32 %v404_v20, 0.0  ;;  %v467_v20 = vpop.permute.xlu0 %466 }
 0x3ae   :  { %v408_v23 = vadd.f32 %v407_v21, %v266_v19  ;;  %v409_v24 = vpop.f32.mrb[17].mxu1  ;;  %2054 = vmatpush1.bf16.msra.mxu0 %v2053_v15 }
 0x3af   :  { %v410_v25 = vadd.f32 %v409_v24, %v266_v19 }
 0x3b0   :  { %v426_v27 = vmax.f32 %v408_v23, 0.0 }
 0x3b1   :  { %v427_v29 = vmax.f32 %v410_v25, 0.0  ;;  %v472_v25 = vpop.permute.xlu1 %471 }
 0x3b2   :  { %v2057_v32 = vpack.c.bf16 %v426_v27, %v424_v26 }
 0x3b3   :  { %v2055_v33 = vpack.c.bf16 %v427_v29, %v425_v28 }
 0x3b5   :  { %2056 = vmatprep.subr.bf16.mxu0 %v2055_v33 }
 0x3b6   :  { %2058 = vmatpush1.bf16.msra.mxu0 %v2057_v32 }
 0x3b9   :  { %1840 = vmatmul.mubr.msk.f32.vlgmr.msra.gmra.mrb[0].mxu0 %vm3261_vm13, %v428_v34 }
 0x3ba   :  { %579 = vmatprep.mubr.f32.mxu0 %v2466_v11 }
 0x3bd   :  { %1841 = vmatmul.mubr.msk.f32.gmra.mrb[2].mxu0 %vm3261_vm13, %v429_v35 }
 0x3be   :  { %585 = vmatprep.mubr.f32.mxu0 %v2466_v11 }
 0x3c1   :  { %1842 = vmatmul.mubr.msk.f32.gmra.mrb[4].mxu0 %vm3261_vm13, %v430_v36 }
 0x3c2   :  { %591 = vmatprep.mubr.f32.mxu0 %v2466_v11 }
 0x3c5   :  { %1843 = vmatmul.mubr.msk.f32.gmra.mrb[6].mxu0 %vm3261_vm13, %v431_v37 }
 0x3c6   :  { %597 = vmatprep.mubr.f32.mxu0 %v2466_v11 }
 0x3c9   :  { %1844 = vmatmul.mubr.msk.f32.gmra.mrb[8].mxu0 %vm3261_vm13, %v432_v38 }
 0x3ca   :  { %603 = vmatprep.mubr.f32.mxu0 %v2466_v11 }
 0x3cd   :  { %1845 = vmatmul.mubr.msk.f32.gmra.mrb[10].mxu0 %vm3261_vm13, %v433_v39 }
 0x3ce   :  { %609 = vmatprep.mubr.f32.mxu0 %v2466_v11 }
 0x3d1   :  { %1846 = vmatmul.mubr.msk.f32.gmra.mrb[12].mxu0 %vm3261_vm13, %v434_v40 }
 0x3d2   :  { %615 = vmatprep.mubr.f32.mxu0 %v2466_v11 }
 0x3d5   :  { %1847 = vmatmul.mubr.msk.f32.gmra.mrb[14].mxu0 %vm3261_vm13, %v435_v41  ;;  %v477_v41 = vpop.permute.xlu0 %476 }
 0x3d6   :  { %1013 = vmatprep.mubr.f32.mxu0 %v2466_v11 }
 0x48c   :  { %v575_v44 = vpop.f32.mrb[0].mxu0 }
 0x48d   :  { %v577_v45 = vpop.f32.mrb[1].mxu0  ;;  %v576_v46 = vadd.f32 %v575_v44, %v447_v42 }
 0x48e   :  { %v578_v47 = vadd.f32 %v577_v45, %v447_v42  ;;  %v482_v45 = vpop.permute.xlu1 %481 }
 0x48f   :  { %v622_v55 = vmax.f32 %v576_v46, 0.0 }
 0x490   :  { %v581_v48 = vpop.f32.mrb[2].mxu0  ;;  %v623_v58 = vmax.f32 %v578_v47, 0.0 }
 0x491   :  { %v582_v49 = vadd.f32 %v581_v48, %v452_v43  ;;  %v583_v52 = vpop.f32.mrb[3].mxu0 }
 0x492   :  { %v584_v54 = vadd.f32 %v583_v52, %v452_v43 }
 0x493   :  { %v624_v56 = vmax.f32 %v582_v49, 0.0 }
 0x494   :  { %v625_v59 = vmax.f32 %v584_v54, 0.0  ;;  %v587_v60 = vpop.f32.mrb[4].mxu0 }
 0x495   :  { %v2719_v62 = vpack.c.bf16 %v624_v56, %v622_v55  ;;  %v589_v63 = vpop.f32.mrb[5].mxu0  ;;  %v2232_v0 = vpack.i.bf16 %v624_v56, %v622_v55  ;;  %v588_v3 = vadd.f32 %v587_v60, %v457_v53 }
 0x496   :  { %v2237_v1 = vpack.i.bf16 %v625_v59, %v623_v58  ;;  %v2721_v2 = vpack.c.bf16 %v625_v59, %v623_v58  ;;  %v590_v5 = vadd.f32 %v589_v63, %v457_v53 }
 0x497   :  { %2233 = vrot.lane.b32.xlu0 %v2232_v0, %s2467_s14  ;;  %v626_v12 = vmax.f32 %v588_v3, 0.0  ;;  %v768_v3 = vld [vmem:[%s3258_s7] sm:$0xff] }
 0x498   :  { %v593_v6 = vpop.f32.mrb[6].mxu0  ;;  %2238 = vrot.lane.b32.xlu1 %v2237_v1, %s2467_s14  ;;  %v627_v14 = vmax.f32 %v590_v5, 0.0 }
 0x499   :  { %v594_v7 = vadd.f32 %v593_v6, %v462_v4  ;;  %v595_v8 = vpop.f32.mrb[7].mxu0 }
 0x49a   :  { %v596_v9 = vadd.f32 %v595_v8, %v462_v4 }
 0x49b   :  { %v628_v13 = vmax.f32 %v594_v7, 0.0 }
 0x49c   :  { %v629_v15 = vmax.f32 %v596_v9, 0.0  ;;  %v599_v16 = vpop.f32.mrb[8].mxu0 }
 0x49d   :  { %v2725_v17 = vpack.c.bf16 %v628_v13, %v626_v12  ;;  %v601_v18 = vpop.f32.mrb[9].mxu0  ;;  %v2242_v19 = vpack.i.bf16 %v628_v13, %v626_v12  ;;  %v600_v24 = vadd.f32 %v599_v16, %v467_v20 }
 0x49e   :  { %v2247_v21 = vpack.i.bf16 %v629_v15, %v627_v14  ;;  %v2727_v23 = vpack.c.bf16 %v629_v15, %v627_v14  ;;  %v602_v26 = vadd.f32 %v601_v18, %v467_v20 }
 0x49f   :  { %2243 = vrot.lane.b32.xlu0 %v2242_v19, %s2467_s14  ;;  %v630_v33 = vmax.f32 %v600_v24, 0.0 }
 0x4a0   :  { %v605_v27 = vpop.f32.mrb[10].mxu0  ;;  %2248 = vrot.lane.b32.xlu1 %v2247_v21, %s2467_s14  ;;  %v631_v35 = vmax.f32 %v602_v26, 0.0 }
 0x4a1   :  { %v606_v28 = vadd.f32 %v605_v27, %v472_v25  ;;  %v607_v29 = vpop.f32.mrb[11].mxu0 }
 0x4a2   :  { %v608_v32 = vadd.f32 %v607_v29, %v472_v25 }
 0x4a3   :  { %v632_v34 = vmax.f32 %v606_v28, 0.0 }
 0x4a4   :  { %v633_v36 = vmax.f32 %v608_v32, 0.0  ;;  %v611_v37 = vpop.f32.mrb[12].mxu0 }
 0x4a5   :  { %v2731_v38 = vpack.c.bf16 %v632_v34, %v630_v33  ;;  %v613_v39 = vpop.f32.mrb[13].mxu0  ;;  %v2252_v40 = vpack.i.bf16 %v632_v34, %v630_v33  ;;  %v612_v44 = vadd.f32 %v611_v37, %v477_v41 }
 0x4a6   :  { %v2257_v42 = vpack.i.bf16 %v633_v36, %v631_v35  ;;  %v2733_v43 = vpack.c.bf16 %v633_v36, %v631_v35  ;;  %v614_v46 = vadd.f32 %v613_v39, %v477_v41 }
 0x4a7   :  { %2253 = vrot.lane.b32.xlu0 %v2252_v40, %s2467_s14  ;;  %v634_v53 = vmax.f32 %v612_v44, 0.0 }
 0x4a8   :  { %v617_v47 = vpop.f32.mrb[14].mxu0  ;;  %2258 = vrot.lane.b32.xlu1 %v2257_v42, %s2467_s14  ;;  %v635_v55 = vmax.f32 %v614_v46, 0.0 }
 0x4a9   :  { %v618_v48 = vadd.f32 %v617_v47, %v482_v45  ;;  %v619_v49 = vpop.f32.mrb[15].mxu0 }
 0x4aa   :  { %v620_v52 = vadd.f32 %v619_v49, %v482_v45 }
 0x4ab   :  { %v636_v54 = vmax.f32 %v618_v48, 0.0 }
 0x4ac   :  { %v637_v56 = vmax.f32 %v620_v52, 0.0 }
 0x4ad   :  { %v2737_v58 = vpack.c.bf16 %v636_v54, %v634_v53  ;;  %v2262_v59 = vpack.i.bf16 %v636_v54, %v634_v53 }
 0x4ae   :  { %v2267_v60 = vpack.i.bf16 %v637_v56, %v635_v55  ;;  %v2739_v63 = vpack.c.bf16 %v637_v56, %v635_v55 }
 0x4af   :  { %2263 = vrot.lane.b32.xlu0 %v2262_v59, %s2467_s14 }
 0x4b0   :  { %2268 = vrot.lane.b32.xlu1 %v2267_v60, %s2467_s14 }
 0x4b3   :  { %2273 = vrot.lane.b32.xlu0 %v2232_v0, %s2468_s15  ;;  %v767_v0 = vld [vmem:[%s3257_s6 + $0x8] sm:$0xff] }
 0x4b4   :  { %2278 = vrot.lane.b32.xlu1 %v2237_v1, %s2468_s15  ;;  %1912 = vmatprep.mubr.msk.f32.mxu1 %vm3261_vm13, %v767_v0 }
 0x4b7   :  { %2283 = vrot.lane.b32.xlu0 %v2242_v19, %s2468_s15 }
 0x4b8   :  { %2288 = vrot.lane.b32.xlu1 %v2247_v21, %s2468_s15 }
 0x4bb   :  { %2293 = vrot.lane.b32.xlu0 %v2252_v40, %s2468_s15 }
 0x4bc   :  { %2298 = vrot.lane.b32.xlu1 %v2257_v42, %s2468_s15 }
 0x4bf   :  { %2303 = vrot.lane.b32.xlu0 %v2262_v59, %s2468_s15 }
 0x4c0   :  { %2308 = vrot.lane.b32.xlu1 %v2267_v60, %s2468_s15 }
 0x4c3   :  { %771 = vperm.xlu0 %2230, %v768_v3  }
 0x509   :  { %v2234_v1 = vpop.permute.xlu0 %2233 }
 0x50a   :  { %v2236_v4 = vunpack.i.h.bf16 %v2234_v1  ;;  %v2235_v5 = vunpack.i.l.bf16 %v2234_v1  ;;  %v2239_v6 = vpop.permute.xlu1 %2238 }
 0x50b   :  { %v2241_v7 = vunpack.i.h.bf16 %v2239_v6  ;;  %v2240_v8 = vunpack.i.l.bf16 %v2239_v6 }
 0x50d   :  { %v670_v12 = vsel %vm189_vm3, %v2235_v5, %v2240_v8  ;;  %v671_v13 = vsel %vm189_vm3, %v2236_v4, %v2241_v7  ;;  %v678_v14 = vsel %vm189_vm3, %v2240_v8, %v2235_v5  ;;  %v679_v15 = vsel %vm189_vm3, %v2241_v7, %v2236_v4 }
 0x50e   :  { %v2059_v18 = vpack.c.bf16 %v671_v13, %v670_v12  ;;  %v2062_v19 = vpack.c.bf16 %v679_v15, %v678_v14 }
 0x510   :  { %2061 = vmatprep.subr.msk.bf16.mxu1 %vm2762_vm0, %v2059_v18 }
 0x511   :  { %v2244_v20 = vpop.permute.xlu0 %2243  ;;  %2064 = vmatpush1.bf16.msk.msra.mxu1 %vm2774_vm1, %v2062_v19 }
 0x512   :  { %v2246_v21 = vunpack.i.h.bf16 %v2244_v20  ;;  %v2245_v24 = vunpack.i.l.bf16 %v2244_v20  ;;  %v2249_v25 = vpop.permute.xlu1 %2248 }
 0x513   :  { %v2251_v26 = vunpack.i.h.bf16 %v2249_v25  ;;  %v2250_v27 = vunpack.i.l.bf16 %v2249_v25 }
 0x515   :  { %v672_v28 = vsel %vm189_vm3, %v2245_v24, %v2250_v27  ;;  %v673_v29 = vsel %vm189_vm3, %v2246_v21, %v2251_v26  ;;  %v680_v32 = vsel %vm189_vm3, %v2250_v27, %v2245_v24  ;;  %v681_v33 = vsel %vm189_vm3, %v2251_v26, %v2246_v21 }
 0x516   :  { %v2065_v34 = vpack.c.bf16 %v673_v29, %v672_v28  ;;  %v2068_v35 = vpack.c.bf16 %v681_v33, %v680_v32 }
 0x518   :  { %2067 = vmatprep.subr.msk.bf16.mxu1 %vm2762_vm0, %v2065_v34 }
 0x519   :  { %v2254_v36 = vpop.permute.xlu0 %2253  ;;  %2070 = vmatpush1.bf16.msk.msra.mxu1 %vm2774_vm1, %v2068_v35 }
 0x51a   :  { %v2256_v37 = vunpack.i.h.bf16 %v2254_v36  ;;  %v2255_v39 = vunpack.i.l.bf16 %v2254_v36  ;;  %v2259_v40 = vpop.permute.xlu1 %2258 }
 0x51b   :  { %v2261_v41 = vunpack.i.h.bf16 %v2259_v40  ;;  %v2260_v42 = vunpack.i.l.bf16 %v2259_v40 }
 0x51d   :  { %v674_v44 = vsel %vm189_vm3, %v2255_v39, %v2260_v42  ;;  %v675_v45 = vsel %vm189_vm3, %v2256_v37, %v2261_v41  ;;  %v682_v46 = vsel %vm189_vm3, %v2260_v42, %v2255_v39  ;;  %v683_v47 = vsel %vm189_vm3, %v2261_v41, %v2256_v37 }
 0x51e   :  { %v2071_v48 = vpack.c.bf16 %v675_v45, %v674_v44  ;;  %v2074_v49 = vpack.c.bf16 %v683_v47, %v682_v46 }
 0x520   :  { %2073 = vmatprep.subr.msk.bf16.mxu1 %vm2762_vm0, %v2071_v48 }
 0x521   :  { %v2264_v52 = vpop.permute.xlu0 %2263  ;;  %2076 = vmatpush1.bf16.msk.msra.mxu1 %vm2774_vm1, %v2074_v49 }
 0x522   :  { %v2266_v53 = vunpack.i.h.bf16 %v2264_v52  ;;  %v2265_v54 = vunpack.i.l.bf16 %v2264_v52  ;;  %v2269_v55 = vpop.permute.xlu1 %2268 }
 0x523   :  { %v2271_v56 = vunpack.i.h.bf16 %v2269_v55  ;;  %v2270_v59 = vunpack.i.l.bf16 %v2269_v55 }
 0x525   :  { %v676_v60 = vsel %vm189_vm3, %v2265_v54, %v2270_v59  ;;  %v677_v3 = vsel %vm189_vm3, %v2266_v53, %v2271_v56  ;;  %v684_v0 = vsel %vm189_vm3, %v2270_v59, %v2265_v54  ;;  %v685_v1 = vsel %vm189_vm3, %v2271_v56, %v2266_v53  ;;  %v2274_v6 = vpop.permute.xlu0 %2273 }
 0x526   :  { %v2077_v4 = vpack.c.bf16 %v677_v3, %v676_v60  ;;  %v2080_v5 = vpack.c.bf16 %v685_v1, %v684_v0  ;;  %v2279_v7 = vpop.permute.xlu1 %2278  ;;  %v2276_v13 = vunpack.i.h.bf16 %v2274_v6  ;;  %v2275_v14 = vunpack.i.l.bf16 %v2274_v6  ;;  %v766_v1 = vld [vmem:[%s3257_s6] sm:$0xff] }
 0x527   :  { %v2281_v15 = vunpack.i.h.bf16 %v2279_v7  ;;  %v2280_v18 = vunpack.i.l.bf16 %v2279_v7 }
 0x528   :  { %2079 = vmatprep.subr.msk.bf16.mxu1 %vm2762_vm0, %v2077_v4 }
 0x529   :  { %2082 = vmatpush1.bf16.msk.msra.mxu1 %vm2774_vm1, %v2080_v5  ;;  %v2284_v8 = vpop.permute.xlu0 %2283  ;;  %v735_v26 = vsel %vm198_vm6, %v2276_v13, %v2281_v15 }
 0x52a   :  { %2084 = vmatprep.subr.bf16.mxu1 %v2721_v2  ;;  %v2289_v12 = vpop.permute.xlu1 %2288  ;;  %v742_v2 = vsel %vm198_vm6, %v2280_v18, %v2275_v14  ;;  %v2285_v21 = vunpack.i.l.bf16 %v2284_v8 }
 0x52b   :  { %v2291_v24 = vunpack.i.h.bf16 %v2289_v12  ;;  %v2290_v25 = vunpack.i.l.bf16 %v2289_v12 }
 0x52d   :  { %2086 = vmatpush1.bf16.msra.mxu1 %v2719_v62  ;;  %v743_v62 = vsel %vm198_vm6, %v2281_v15, %v2276_v13  ;;  %v2294_v19 = vpop.permute.xlu0 %2293  ;;  %v744_v33 = vsel %vm198_vm6, %v2290_v25, %v2285_v21  ;;  %v736_v39 = vsel %vm198_vm6, %v2285_v21, %v2290_v25 }
 0x52e   :  { %2088 = vmatprep.subr.bf16.mxu1 %v2727_v23  ;;  %v2299_v20 = vpop.permute.xlu1 %2298  ;;  %v2286_v23 = vunpack.i.h.bf16 %v2284_v8  ;;  %v2099_v27 = vpack.c.bf16 %v743_v62, %v742_v2  ;;  %v2296_v28 = vunpack.i.h.bf16 %v2294_v19  ;;  %v2295_v29 = vunpack.i.l.bf16 %v2294_v19 }
 0x52f   :  { %v2301_v32 = vunpack.i.h.bf16 %v2299_v20 }
 0x530   :  { %v737_v40 = vsel %vm198_vm6, %v2286_v23, %v2291_v24 }
 0x531   :  { %2090 = vmatpush1.bf16.msra.mxu1 %v2725_v17  ;;  %v2304_v35 = vpop.permute.xlu0 %2303  ;;  %v747_v42 = vsel %vm198_vm6, %v2301_v32, %v2296_v28  ;;  %v2108_v48 = vpack.c.bf16 %v737_v40, %v736_v39  ;;  %v739_v52 = vsel %vm198_vm6, %v2296_v28, %v2301_v32 }
 0x532   :  { %2092 = vmatprep.subr.bf16.mxu1 %v2733_v43  ;;  %v734_v43 = vsel %vm198_vm6, %v2275_v14, %v2280_v18  ;;  %v2309_v36 = vpop.permute.xlu1 %2308  ;;  %v2306_v44 = vunpack.i.h.bf16 %v2304_v35  ;;  %v2305_v45 = vunpack.i.l.bf16 %v2304_v35 }
 0x533   :  { %v2102_v37 = vpack.c.bf16 %v735_v26, %v734_v43  ;;  %v2311_v46 = vunpack.i.h.bf16 %v2309_v36  ;;  %v2310_v47 = vunpack.i.l.bf16 %v2309_v36 }
 0x535   :  { %2094 = vmatpush1.bf16.msra.mxu1 %v2731_v38  ;;  %v2300_v38 = vunpack.i.l.bf16 %v2299_v20  ;;  %v748_v54 = vsel %vm198_vm6, %v2310_v47, %v2305_v45  ;;  %v749_v55 = vsel %vm198_vm6, %v2311_v46, %v2306_v44  ;;  %v740_v59 = vsel %vm198_vm6, %v2305_v45, %v2310_v47 }
 0x536   :  { %2096 = vmatprep.subr.bf16.mxu1 %v2739_v63  ;;  %v745_v63 = vsel %vm198_vm6, %v2291_v24, %v2286_v23  ;;  %v741_v60 = vsel %vm198_vm6, %v2306_v44, %v2311_v46  ;;  %v2117_v3 = vpack.c.bf16 %v749_v55, %v748_v54 }
 0x537   :  { %v2105_v41 = vpack.c.bf16 %v745_v63, %v744_v33  ;;  %v738_v49 = vsel %vm198_vm6, %v2295_v29, %v2300_v38  ;;  %v2120_v0 = vpack.c.bf16 %v741_v60, %v740_v59  ;;  %v1915_v60 = vld [vmem:[%s3252_s1 + $0x8] sm:$0xff] }
 0x538   :  { %v2114_v56 = vpack.c.bf16 %v739_v52, %v738_v49 }
 0x539   :  { %2098 = vmatpush1.bf16.msra.mxu1 %v2737_v58  ;;  %v746_v58 = vsel %vm198_vm6, %v2300_v38, %v2295_v29 }
 0x53a   :  { %2101 = vmatprep.subr.msk.bf16.mxu1 %vm2833_vm15, %v2099_v27  ;;  %v2111_v53 = vpack.c.bf16 %v747_v42, %v746_v58 }
 0x53d   :  { %2104 = vmatpush1.bf16.msk.msra.mxu1 %vm2846_vm10, %v2102_v37 }
 0x53e   :  { %2107 = vmatprep.subr.msk.bf16.mxu1 %vm2833_vm15, %v2105_v41 }
 0x541   :  { %2110 = vmatpush1.bf16.msk.msra.mxu1 %vm2846_vm10, %v2108_v48 }
 0x542   :  { %2113 = vmatprep.subr.msk.bf16.mxu1 %vm2833_vm15, %v2111_v53  ;;  %v772_v4 = vpop.permute.xlu0 %771 }
 0x545   :  { %2116 = vmatpush1.bf16.msk.msra.mxu1 %vm2846_vm10, %v2114_v56 }
 0x546   :  { %2119 = vmatprep.subr.msk.bf16.mxu1 %vm2833_vm15, %v2117_v3 }
 0x549   :  { %2122 = vmatpush1.bf16.msk.msra.mxu1 %vm2846_vm10, %v2120_v0 }
 0x54c   :  { %842 = vmatmul.mubr.f32.vlgmr.msra.gmra.mrb[18].mxu1 %v766_v1 }
 0x54d   :  { %1407 = vmatprep.mubr.f32.mxu1 %v2466_v11 }
 0x61f   :  { %v843_v5 = vpop.f32.mrb[18].mxu1 }
 0x620   :  { %v844_v6 = vadd.f32 %v843_v5, %v772_v4  ;;  %v845_v7 = vpop.f32.mrb[19].mxu1  ;;  %v1926_v5 = vld [vmem:[%s3254_s3 + $0x48] sm:$0xff] }
 0x621   :  { %v846_v8 = vadd.f32 %v845_v7, %v772_v4  ;;  %v1925_v4 = vld [vmem:[%s3254_s3 + $0x40] sm:$0xff]  ;;  %v1928_v7 = vld [vmem:[%s3254_s3 + $0x58] sm:$0xff] }
 0x622   :  { %v848_v12 = vadd.f32 2.0, %v844_v6  ;;  %v864_v13 = vrot.slane %v844_v6, 4  ;;  %v1927_v6 = vld [vmem:[%s3254_s3 + $0x50] sm:$0xff] }
 0x623   :  { %v849_v14 = vadd.f32 2.0, %v846_v8  ;;  %v865_v15 = vrot.slane %v846_v8, 4  ;;  %v1929_v8 = vld [vmem:[%s3254_s3 + $0x60] sm:$0xff] }
 0x624   :  { %v1913_v18 = vmul.f32 -1.442695, %v848_v12  ;;  %v868_v2 = vadd.f32 %v864_v13, %v2539_v30  ;;  %v1930_v12 = vld [vmem:[%s3254_s3 + $0x68] sm:$0xff]  ;;  %v1931_v13 = vld [vmem:[%s3254_s3 + $0x70] sm:$0xff] }
 0x625   :  { %v1914_v62 = vmul.f32 -1.442695, %v849_v14  ;;  %v869_v19 = vadd.f32 %v865_v15, %v2541_v31  ;;  %v1932_v14 = vld [vmem:[%s3254_s3 + $0x78] sm:$0xff]  ;;  %v1951_v15 = vld [vmem:[%s3256_s5 + $0x40] sm:$0xff] }
 0x626   :  { %2410 = vpow2.f32 %v1913_v18  ;;  %v1952_v18 = vld [vmem:[%s3256_s5 + $0x48] sm:$0xff] }
 0x627   :  { %2412 = vpow2.f32 %v1914_v62  ;;  %v1954_v62 = vld [vmem:[%s3256_s5 + $0x58] sm:$0xff] }
 0x630   :  { %v2411_v20 = vpop.eup %2410 }
 0x631   :  { %v2413_v23 = vpop.eup %2412  ;;  %v856_v21 = vadd.f32 1.0, %v2411_v20  ;;  %v1956_v20 = vld [vmem:[%s3256_s5 + $0x68] sm:$0xff] }
 0x632   :  { %v857_v24 = vadd.f32 1.0, %v2413_v23  ;;  %v1957_v23 = vld [vmem:[%s3256_s5 + $0x70] sm:$0xff] }
 0x633   :  { %2414 = vrcp.f32 %v856_v21  ;;  %v1958_v21 = vld [vmem:[%s3256_s5 + $0x78] sm:$0xff] }
 0x634   :  { %2416 = vrcp.f32 %v857_v24 }
 0x63d   :  { %v2892_v25 = vpop.eup %2414 }
 0x63e   :  { %v2894_v43 = vpop.eup %2416  ;;  %v870_v26 = vmul.f32 %v2892_v25, %v868_v2  ;;  %v1953_v2 = vld [vmem:[%s3256_s5 + $0x50] sm:$0xff] }
 0x63f   :  { %v871_v27 = vmul.f32 %v2894_v43, %v869_v19  ;;  %v1955_v19 = vld [vmem:[%s3256_s5 + $0x60] sm:$0xff] }
 0x640   :  { %v898_v28 = vsel %vm209_vm7, %v2539_v30, %v870_v26 }
 0x641   :  { %v899_v29 = vsel %vm209_vm7, %v2541_v31, %v871_v27 }
 0x642   :  { %v900_v32 = vadd.f32 %v899_v29, %v898_v28 }
 0x644   :  { %901 = vadd.xlane.f32.xlu1 %v900_v32 }
 0x6d1   :  { %v902_v38 = vpop.xlane.xlu1 %901 }
 0x6d2   :  { %v903_v33 = vmul.f32 0.00390625, %v902_v38 }
 0x6d4   :  { %v904_v63 = vsub.f32 0.0, %v903_v33 }
 0x6d6   :  { %v905_v35 = vsub.f32 %v898_v28, %v904_v63  ;;  %v906_v36 = vsub.f32 %v899_v29, %v904_v63  ;;  %v938_v53 = vadd.f32 %v904_v63, %v898_v28  ;;  %v939_v54 = vadd.f32 %v904_v63, %v899_v29 }
 0x6d8   :  { %v907_v37 = vmul.f32 %v905_v35, %v905_v35  ;;  %v908_v39 = vmul.f32 %v906_v36, %v906_v36 }
 0x6da   :  { %v909_v40 = vadd.f32 %v908_v39, %v907_v37 }
 0x6dc   :  { %910 = vadd.xlane.f32.xlu0 %v909_v40 }
 0x769   :  { %v911_v41 = vpop.xlane.xlu0 %910 }
 0x76a   :  { %v912_v58 = vmul.f32 0.00390625, %v911_v41 }
 0x76c   :  { %2418 = vrsqrt.f32 %v912_v58  ;;  %vm915_vm14 = vcmp.eq.f32.partialorder %v912_v58, inf  ;;  %v918_v30 = vand.u32 2147483648, %v912_v58  ;;  %vm917_vm13 = vcmp.eq.f32.partialorder %v912_v58, 0.0 }
 0x776   :  { %v2419_v42 = vpop.eup %2418 }
 0x777   :  { %v914_v44 = vmul.f32 %v2419_v42, %v912_v58 }
 0x779   :  { %v916_v45 = vsel %vm915_vm14, %v912_v58, %v914_v44 }
 0x77a   :  { %v919_v31 = vsel %vm917_vm13, %v918_v30, %v916_v45 }
 0x77b   :  { %2420 = vrcp.f32 %v919_v31  ;;  %v1920_v31 = vld [vmem:[%s3253_s2 + $0x58] sm:$0xff] }
 0x785   :  { %v2421_v46 = vpop.eup %2420 }
 0x786   :  { %v922_v47 = vadd.f32 1e-06, %v2421_v46  ;;  %v1921_v46 = vld [vmem:[%s3253_s2 + $0x60] sm:$0xff] }
 0x788   :  { %2422 = vlog2.f32 %v922_v47  ;;  %v1922_v47 = vld [vmem:[%s3253_s2 + $0x68] sm:$0xff] }
 0x792   :  { %v2423_v48 = vpop.eup %2422 }
 0x793   :  { %v2902_v49 = vmul.f32 0.6931472, %v2423_v48  ;;  %v1923_v48 = vld [vmem:[%s3253_s2 + $0x70] sm:$0xff] }
 0x795   :  { %v940_v52 = vmul.f32 1.442695, %v2902_v49 }
 0x797   :  { %2424 = vpow2.f32 %v940_v52  ;;  %v1924_v52 = vld [vmem:[%s3253_s2 + $0x78] sm:$0xff] }
 0x798   :  { %2426 = vlog2.f32 %v2892_v25 }
 0x799   :  { %2428 = vlog2.f32 %v2894_v43 }
 0x7a1   :  { %v2425_v55 = vpop.eup %2424 }
 0x7a2   :  { %v943_v56 = vmul.f32 %v2425_v55, %v939_v54  ;;  %v942_v59 = vmul.f32 %v2425_v55, %v938_v53 }
 0x7a4   :  { %949 = vmatprep.subr.mxu0 %v943_v56 }
 0x7a5   :  { %950 = vmatpush1.msra.mxu0 %v942_v59 }
 0x7a6   :  { %1916 = vmatmul.mubr.msk.f32.vlgmr.msra.gmra.mrb[16].mxu0 %vm110_vm2, %v1915_v60  ;;  %vm3276_vm2 = vcmask 523264  }
 0x7a7   :  { %1196 = vmatprep.mubr.f32.mxu0 %v2466_v11  ;;  %vm3283_vm13 = vmmov %vm3276_vm2 }
 0x7a8   :  { %vm3284_vm14 = vmmov %vm3276_vm2 }
 0x879   :  { %v2910_v3 = vpop.f32.mrb[16].mxu0 }
 0x87a   :  { %1784 = vst [vmem:[#allocation2] sm:$0xf] %v2910_v3  ;;  %v2913_v0 = vpop.f32.mrb[17].mxu0  ;;  %v1038_v38 = vrot.slane %v2910_v3, 4  ;;  %v1734_v25 = vmul.f32 %v2910_v3, %v2910_v3 }
 0x87b   :  { %1785 = vst [vmem:[#allocation2 + $0x8] sm:$0xf] %v2913_v0  ;;  %v2317_v1 = vpack.i.bf16 %v2913_v0, %v2910_v3  ;;  %v1039_v33 = vrot.slane %v2913_v0, 4  ;;  %v1735_v43 = vmul.f32 %v2913_v0, %v2913_v0 }
 0x87d   :  { %2318 = vrot.lane.b32.xlu1 %v2317_v1, %s2468_s15  ;;  %2313 = vrot.lane.b32.xlu0 %v2317_v1, %s2467_s14 }
 0x881   :  { %1064 = vperm.xlu1 %2231, %v1925_v4   ;;  %1069 = vperm.xlu0 %2230, %v1926_v5  }
 0x885   :  { %1074 = vperm.xlu1 %2231, %v1927_v6   ;;  %1079 = vperm.xlu0 %2230, %v1928_v7  }
 0x889   :  { %1084 = vperm.xlu1 %2231, %v1929_v8   ;;  %1089 = vperm.xlu0 %2230, %v1930_v12  }
 0x88d   :  { %1094 = vperm.xlu1 %2231, %v1931_v13   ;;  %1099 = vperm.xlu0 %2230, %v1932_v14  }
 0x891   :  { %1281 = vperm.xlu1 %2231, %v1951_v15   ;;  %1286 = vperm.xlu0 %2230, %v1952_v18  }
 0x895   :  { %1291 = vperm.xlu1 %2231, %v1953_v2   ;;  %1296 = vperm.xlu0 %2230, %v1954_v62  }
 0x899   :  { %1301 = vperm.xlu1 %2231, %v1955_v19   ;;  %1306 = vperm.xlu0 %2230, %v1956_v20  }
 0x89d   :  { %1311 = vperm.xlu1 %2231, %v1957_v23   ;;  %1316 = vperm.xlu0 %2230, %v1958_v21  }
 0x8ef   :  { %v2314_v24 = vpop.permute.xlu0 %2313  ;;  %v2319_v26 = vpop.permute.xlu1 %2318 }
 0x8f0   :  { %v2316_v27 = vunpack.i.h.bf16 %v2314_v24  ;;  %v2315_v28 = vunpack.i.l.bf16 %v2314_v24  ;;  %v2321_v29 = vunpack.i.h.bf16 %v2319_v26  ;;  %v2320_v32 = vunpack.i.l.bf16 %v2319_v26 }
 0x8f2   :  { %v1024_v63 = vsel %vm189_vm3, %v2315_v28, %v2316_v27  ;;  %v1025_v35 = vsel %vm189_vm3, %v2316_v27, %v2315_v28  ;;  %v1032_v36 = vsel %vm198_vm6, %v2320_v32, %v2321_v29  ;;  %v1033_v37 = vsel %vm198_vm6, %v2321_v29, %v2320_v32 }
 0x8f3   :  { %v1026_v39 = vsel %vm59_vm4, 0.0, %v1025_v35  ;;  %v1027_v40 = vsel %vm2601_vm5, 0.0, %v1024_v63  ;;  %v1034_v41 = vsel %vm61_vm8, 0.0, %v1032_v36  ;;  %v1035_v58 = vsel %vm2611_vm9, 0.0, %v1033_v37  ;;  %vm3277_vm4 = vmmov %vm3276_vm2 }
 0x8f4   :  { %v1042_v42 = vsel %vm209_vm7, %v1026_v39, %v1038_v38  ;;  %v1043_v44 = vsel %vm209_vm7, %v1027_v40, %v1039_v33  ;;  %vm3278_vm5 = vmmov %vm3276_vm2 }
 0x8f5   :  { %v2126_v30 = vpack.c.bf16 %v1034_v41, %v1042_v42  ;;  %v2123_v45 = vpack.c.bf16 %v1035_v58, %v1043_v44  ;;  %vm3279_vm8 = vmmov %vm3276_vm2 }
 0x8f6   :  { %vm3280_vm9 = vmmov %vm3276_vm2 }
 0x8f7   :  { %2125 = vmatprep.subr.msk.bf16.mxu0 %vm2632_vm11, %v2123_v45 }
 0x8f8   :  { %2128 = vmatpush1.bf16.msk.msra.mxu0 %vm2632_vm11, %v2126_v30  ;;  %vm3281_vm11 = vmmov %vm3276_vm2 }
 0x8fb   :  { %1935 = vmatmul.mubr.msk.f32.vlgmr.msra.gmra.mrb[18].mxu0 %vm268_vm12, %v1917_v57 }
 0x8fc   :  { %1202 = vmatprep.mubr.f32.mxu0 %v2466_v11 }
 0x8ff   :  { %1936 = vmatmul.mubr.msk.f32.gmra.mrb[20].mxu0 %vm268_vm12, %v1918_v61 }
 0x900   :  { %1208 = vmatprep.mubr.f32.mxu0 %v2466_v11  ;;  %v1065_v55 = vpop.permute.xlu1 %1064  ;;  %v1070_v59 = vpop.permute.xlu0 %1069 }
 0x903   :  { %1937 = vmatmul.mubr.msk.f32.gmra.mrb[22].mxu0 %vm268_vm12, %v1919_v10 }
 0x904   :  { %1214 = vmatprep.mubr.f32.mxu0 %v2466_v11  ;;  %v1075_v2 = vpop.permute.xlu1 %1074  ;;  %v1080_v20 = vpop.permute.xlu0 %1079 }
 0x907   :  { %1938 = vmatmul.mubr.msk.f32.gmra.mrb[24].mxu0 %vm268_vm12, %v1920_v31 }
 0x908   :  { %1220 = vmatprep.mubr.f32.mxu0 %v2466_v11  ;;  %v1085_v36 = vpop.permute.xlu1 %1084  ;;  %v1090_v40 = vpop.permute.xlu0 %1089 }
 0x90b   :  { %1939 = vmatmul.mubr.msk.f32.gmra.mrb[26].mxu0 %vm268_vm12, %v1921_v46 }
 0x90c   :  { %1226 = vmatprep.mubr.f32.mxu0 %v2466_v11 }
 0x90f   :  { %1940 = vmatmul.mubr.msk.f32.gmra.mrb[28].mxu0 %vm268_vm12, %v1922_v47 }
 0x910   :  { %1232 = vmatprep.mubr.f32.mxu0 %v2466_v11 }
 0x913   :  { %1941 = vmatmul.mubr.msk.f32.gmra.mrb[30].mxu0 %vm268_vm12, %v1923_v48  ;;  %v1095_v48 = vpop.permute.xlu1 %1094 }
 0x914   :  { %1238 = vmatprep.mubr.f32.mxu0 %v2466_v11 }
 0x917   :  { %1942 = vmatmul.mubr.msk.f32.gmra.mrb[32].mxu0 %vm268_vm12, %v1924_v52  ;;  %vm3282_vm12 = vmmov %vm3276_vm2 }
 0x9ce   :  { %v1198_v53 = vpop.f32.mrb[18].mxu0 }
 0x9cf   :  { %v1200_v54 = vpop.f32.mrb[19].mxu0  ;;  %v1199_v56 = vadd.f32 %v1198_v53, %v1065_v55 }
 0x9d0   :  { %v1201_v60 = vadd.f32 %v1200_v54, %v1065_v55  ;;  %v1100_v54 = vpop.permute.xlu0 %1099 }
 0x9d1   :  { %v1245_v7 = vmax.f32 %v1199_v56, 0.0 }
 0x9d2   :  { %v1204_v1 = vpop.f32.mrb[20].mxu0  ;;  %v1246_v12 = vmax.f32 %v1201_v60, 0.0 }
 0x9d3   :  { %v1205_v4 = vadd.f32 %v1204_v1, %v1070_v59  ;;  %v1206_v5 = vpop.f32.mrb[21].mxu0 }
 0x9d4   :  { %v1207_v6 = vadd.f32 %v1206_v5, %v1070_v59 }
 0x9d5   :  { %v1247_v8 = vmax.f32 %v1205_v4, 0.0 }
 0x9d6   :  { %v1248_v13 = vmax.f32 %v1207_v6, 0.0  ;;  %v1210_v14 = vpop.f32.mrb[22].mxu0 }
 0x9d7   :  { %v2131_v15 = vpack.c.bf16 %v1247_v8, %v1245_v7  ;;  %v1212_v18 = vpop.f32.mrb[23].mxu0  ;;  %v1211_v19 = vadd.f32 %v1210_v14, %v1075_v2  ;;  %v1944_v14 = vld [vmem:[%s3255_s4 + $0x48] sm:$0xff] }
 0x9d8   :  { %v2129_v62 = vpack.c.bf16 %v1248_v13, %v1246_v12  ;;  %v1213_v23 = vadd.f32 %v1212_v18, %v1075_v2  ;;  %v1943_v13 = vld [vmem:[%s3255_s4 + $0x40] sm:$0xff]  ;;  %v1946_v18 = vld [vmem:[%s3255_s4 + $0x58] sm:$0xff] }
 0x9d9   :  { %v1249_v28 = vmax.f32 %v1211_v19, 0.0  ;;  %v1947_v2 = vld [vmem:[%s3255_s4 + $0x60] sm:$0xff]  ;;  %v1949_v19 = vld [vmem:[%s3255_s4 + $0x70] sm:$0xff] }
 0x9da   :  { %v1216_v21 = vpop.f32.mrb[24].mxu0  ;;  %2130 = vmatprep.subr.bf16.mxu1 %v2129_v62  ;;  %v1250_v32 = vmax.f32 %v1213_v23, 0.0  ;;  %v1948_v62 = vld [vmem:[%s3255_s4 + $0x68] sm:$0xff] }
 0x9db   :  { %v1217_v24 = vadd.f32 %v1216_v21, %v1080_v20  ;;  %v1218_v26 = vpop.f32.mrb[25].mxu0  ;;  %2132 = vmatpush1.bf16.msra.mxu1 %v2131_v15  ;;  %v1945_v15 = vld [vmem:[%s3255_s4 + $0x50] sm:$0xff] }
 0x9dc   :  { %v1219_v27 = vadd.f32 %v1218_v26, %v1080_v20  ;;  %v1950_v20 = vld [vmem:[%s3255_s4 + $0x78] sm:$0xff] }
 0x9dd   :  { %v1251_v29 = vmax.f32 %v1217_v24, 0.0  ;;  %v1282_v24 = vpop.permute.xlu1 %1281 }
 0x9de   :  { %v1252_v38 = vmax.f32 %v1219_v27, 0.0  ;;  %v1222_v33 = vpop.f32.mrb[26].mxu0  ;;  %v1287_v27 = vpop.permute.xlu0 %1286 }
 0x9df   :  { %v2135_v63 = vpack.c.bf16 %v1251_v29, %v1249_v28  ;;  %v1224_v35 = vpop.f32.mrb[27].mxu0  ;;  %v1223_v39 = vadd.f32 %v1222_v33, %v1085_v36 }
 0x9e0   :  { %v2133_v37 = vpack.c.bf16 %v1252_v38, %v1250_v32  ;;  %v1225_v41 = vadd.f32 %v1224_v35, %v1085_v36 }
 0x9e1   :  { %v1253_v45 = vmax.f32 %v1223_v39, 0.0 }
 0x9e2   :  { %v1228_v58 = vpop.f32.mrb[28].mxu0  ;;  %2134 = vmatprep.subr.bf16.mxu1 %v2133_v37  ;;  %v1254_v61 = vmax.f32 %v1225_v41, 0.0 }
 0x9e3   :  { %v1229_v42 = vadd.f32 %v1228_v58, %v1090_v40  ;;  %v1230_v44 = vpop.f32.mrb[29].mxu0  ;;  %2136 = vmatpush1.bf16.msra.mxu1 %v2135_v63  ;;  %v1292_v58 = vpop.permute.xlu1 %1291 }
 0x9e4   :  { %v1231_v30 = vadd.f32 %v1230_v44, %v1090_v40 }
 0x9e5   :  { %v1255_v57 = vmax.f32 %v1229_v42, 0.0 }
 0x9e6   :  { %v1256_v10 = vmax.f32 %v1231_v30, 0.0  ;;  %v1234_v31 = vpop.f32.mrb[30].mxu0 }
 0x9e7   :  { %v2139_v46 = vpack.c.bf16 %v1255_v57, %v1253_v45  ;;  %v1236_v47 = vpop.f32.mrb[31].mxu0  ;;  %v1235_v53 = vadd.f32 %v1234_v31, %v1095_v48  ;;  %v1297_v45 = vpop.permute.xlu0 %1296 }
 0x9e8   :  { %v2137_v52 = vpack.c.bf16 %v1256_v10, %v1254_v61  ;;  %v1237_v55 = vadd.f32 %v1236_v47, %v1095_v48 }
 0x9e9   :  { %v1257_v4 = vmax.f32 %v1235_v53, 0.0 }
 0x9ea   :  { %v1240_v56 = vpop.f32.mrb[32].mxu0  ;;  %2138 = vmatprep.subr.bf16.mxu1 %v2137_v52  ;;  %v1258_v6 = vmax.f32 %v1237_v55, 0.0 }
 0x9eb   :  { %v1241_v59 = vadd.f32 %v1240_v56, %v1100_v54  ;;  %v1242_v60 = vpop.f32.mrb[33].mxu0  ;;  %2140 = vmatpush1.bf16.msra.mxu1 %v2139_v46 }
 0x9ec   :  { %v1243_v1 = vadd.f32 %v1242_v60, %v1100_v54  ;;  %v1302_v60 = vpop.permute.xlu1 %1301 }
 0x9ed   :  { %v1259_v5 = vmax.f32 %v1241_v59, 0.0 }
 0x9ee   :  { %v1260_v7 = vmax.f32 %v1243_v1, 0.0 }
 0x9ef   :  { %v2143_v8 = vpack.c.bf16 %v1259_v5, %v1257_v4 }
 0x9f0   :  { %v2141_v12 = vpack.c.bf16 %v1260_v7, %v1258_v6  ;;  %v1307_v6 = vpop.permute.xlu0 %1306 }
 0x9f2   :  { %2142 = vmatprep.subr.bf16.mxu1 %v2141_v12 }
 0x9f3   :  { %2144 = vmatpush1.bf16.msra.mxu1 %v2143_v8 }
 0x9f6   :  { %1959 = vmatmul.mubr.msk.f32.vlgmr.msra.gmra.mrb[20].mxu1 %vm3276_vm2, %v1943_v13  ;;  %vm90_vm2 = vcmask 7168  }
 0x9f7   :  { %1413 = vmatprep.mubr.f32.mxu1 %v2466_v11 }
 0x9fa   :  { %1960 = vmatmul.mubr.msk.f32.gmra.mrb[22].mxu1 %vm3277_vm4, %v1944_v14 }
 0x9fb   :  { %1419 = vmatprep.mubr.f32.mxu1 %v2466_v11 }
 0x9fe   :  { %1961 = vmatmul.mubr.msk.f32.gmra.mrb[24].mxu1 %vm3278_vm5, %v1945_v15 }
 0x9ff   :  { %1425 = vmatprep.mubr.f32.mxu1 %v2466_v11 }
 0xa02   :  { %1962 = vmatmul.mubr.msk.f32.gmra.mrb[26].mxu1 %vm3279_vm8, %v1946_v18 }
 0xa03   :  { %1431 = vmatprep.mubr.f32.mxu1 %v2466_v11 }
 0xa06   :  { %1963 = vmatmul.mubr.msk.f32.gmra.mrb[28].mxu1 %vm3280_vm9, %v1947_v2 }
 0xa07   :  { %1437 = vmatprep.mubr.f32.mxu1 %v2466_v11 }
 0xa0a   :  { %1964 = vmatmul.mubr.msk.f32.gmra.mrb[30].mxu1 %vm3281_vm11, %v1948_v62 }
 0xa0b   :  { %1443 = vmatprep.mubr.f32.mxu1 %v2466_v11 }
 0xa0e   :  { %1965 = vmatmul.mubr.msk.f32.gmra.mrb[32].mxu1 %vm3282_vm12, %v1949_v19 }
 0xa0f   :  { %1449 = vmatprep.mubr.f32.mxu1 %v2466_v11 }
 0xa12   :  { %1966 = vmatmul.mubr.msk.f32.gmra.mrb[34].mxu1 %vm3283_vm13, %v1950_v20 }
 0xac9   :  { %v1409_v23 = vpop.f32.mrb[20].mxu1 }
 0xaca   :  { %v1411_v21 = vpop.f32.mrb[21].mxu1  ;;  %v1410_v26 = vadd.f32 %v1409_v23, %v1282_v24 }
 0xacb   :  { %v1412_v28 = vadd.f32 %v1411_v21, %v1282_v24  ;;  %v1312_v24 = vpop.permute.xlu1 %1311 }
 0xacc   :  { %v1456_v63 = vmax.f32 %v1410_v26, 0.0 }
 0xacd   :  { %v1415_v29 = vpop.f32.mrb[22].mxu1  ;;  %v1457_v36 = vmax.f32 %v1412_v28, 0.0 }
 0xace   :  { %v1416_v32 = vadd.f32 %v1415_v29, %v1287_v27  ;;  %v1417_v38 = vpop.f32.mrb[23].mxu1  ;;  %v1317_v29 = vpop.permute.xlu0 %1316 }
 0xacf   :  { %v1418_v33 = vadd.f32 %v1417_v38, %v1287_v27 }
 0xad0   :  { %v1458_v35 = vmax.f32 %v1416_v32, 0.0 }
 0xad1   :  { %v1459_v11 = vmax.f32 %v1418_v33, 0.0  ;;  %v1421_v37 = vpop.f32.mrb[24].mxu1 }
 0xad2   :  { %v3070_v39 = vpack.c.bf16 %v1458_v35, %v1456_v63  ;;  %v1423_v40 = vpop.f32.mrb[25].mxu1  ;;  %v2322_v41 = vpack.i.bf16 %v1458_v35, %v1456_v63  ;;  %v1422_v30 = vadd.f32 %v1421_v37, %v1292_v58 }
 0xad3   :  { %v2327_v42 = vpack.i.bf16 %v1459_v11, %v1457_v36  ;;  %v3072_v44 = vpack.c.bf16 %v1459_v11, %v1457_v36  ;;  %v1424_v57 = vadd.f32 %v1423_v40, %v1292_v58 }
 0xad4   :  { %2323 = vrot.lane.b32.xlu1 %v2322_v41, %s2467_s14  ;;  %v1460_v47 = vmax.f32 %v1422_v30, 0.0 }
 0xad5   :  { %v1427_v61 = vpop.f32.mrb[26].mxu1  ;;  %2328 = vrot.lane.b32.xlu0 %v2327_v42, %s2467_s14  ;;  %v1461_v52 = vmax.f32 %v1424_v57, 0.0 }
 0xad6   :  { %v1428_v10 = vadd.f32 %v1427_v61, %v1297_v45  ;;  %v1429_v31 = vpop.f32.mrb[27].mxu1  ;;  %v1968_v61 = vld [vmem:[%s3257_s6 + $0x18] sm:$0xff] }
 0xad7   :  { %v1430_v46 = vadd.f32 %v1429_v31, %v1297_v45  ;;  %2034 = vmatprep.mubr.msk.f32.mxu0 %vm3284_vm14, %v1968_v61 }
 0xad8   :  { %v1462_v48 = vmax.f32 %v1428_v10, 0.0  ;;  %v1969_v10 = vld [vmem:[%s3258_s7 + $0x8] sm:$0xff] }
 0xad9   :  { %v1463_v53 = vmax.f32 %v1430_v46, 0.0  ;;  %v1433_v54 = vpop.f32.mrb[28].mxu1 }
 0xada   :  { %v3076_v55 = vpack.c.bf16 %v1462_v48, %v1460_v47  ;;  %v1435_v56 = vpop.f32.mrb[29].mxu1  ;;  %v2332_v59 = vpack.i.bf16 %v1462_v48, %v1460_v47  ;;  %v1434_v5 = vadd.f32 %v1433_v54, %v1302_v60 }
 0xadb   :  { %v2337_v1 = vpack.i.bf16 %v1463_v53, %v1461_v52  ;;  %v3078_v4 = vpack.c.bf16 %v1463_v53, %v1461_v52  ;;  %v1436_v7 = vadd.f32 %v1435_v56, %v1302_v60 }
 0xadc   :  { %2333 = vrot.lane.b32.xlu1 %v2332_v59, %s2467_s14  ;;  %v1464_v15 = vmax.f32 %v1434_v5, 0.0 }
 0xadd   :  { %v1439_v8 = vpop.f32.mrb[30].mxu1  ;;  %2338 = vrot.lane.b32.xlu0 %v2337_v1, %s2467_s14  ;;  %v1465_v2 = vmax.f32 %v1436_v7, 0.0 }
 0xade   :  { %v1440_v12 = vadd.f32 %v1439_v8, %v1307_v6  ;;  %v1441_v13 = vpop.f32.mrb[31].mxu1 }
 0xadf   :  { %v1442_v14 = vadd.f32 %v1441_v13, %v1307_v6 }
 0xae0   :  { %v1466_v18 = vmax.f32 %v1440_v12, 0.0 }
 0xae1   :  { %v1467_v62 = vmax.f32 %v1442_v14, 0.0  ;;  %v1445_v19 = vpop.f32.mrb[32].mxu1 }
 0xae2   :  { %v3082_v20 = vpack.c.bf16 %v1466_v18, %v1464_v15  ;;  %v1447_v23 = vpop.f32.mrb[33].mxu1  ;;  %v2342_v21 = vpack.i.bf16 %v1466_v18, %v1464_v15  ;;  %v1446_v28 = vadd.f32 %v1445_v19, %v1312_v24 }
 0xae3   :  { %v2347_v26 = vpack.i.bf16 %v1467_v62, %v1465_v2  ;;  %v3084_v27 = vpack.c.bf16 %v1467_v62, %v1465_v2  ;;  %v1448_v32 = vadd.f32 %v1447_v23, %v1312_v24 }
 0xae4   :  { %2343 = vrot.lane.b32.xlu1 %v2342_v21, %s2467_s14  ;;  %v1468_v36 = vmax.f32 %v1446_v28, 0.0 }
 0xae5   :  { %v1451_v38 = vpop.f32.mrb[34].mxu1  ;;  %2348 = vrot.lane.b32.xlu0 %v2347_v26, %s2467_s14  ;;  %v1469_v37 = vmax.f32 %v1448_v32, 0.0 }
 0xae6   :  { %v1452_v33 = vadd.f32 %v1451_v38, %v1317_v29  ;;  %v1453_v63 = vpop.f32.mrb[35].mxu1 }
 0xae7   :  { %v1454_v35 = vadd.f32 %v1453_v63, %v1317_v29 }
 0xae8   :  { %v1470_v11 = vmax.f32 %v1452_v33, 0.0 }
 0xae9   :  { %v1471_v40 = vmax.f32 %v1454_v35, 0.0 }
 0xaea   :  { %v3088_v58 = vpack.c.bf16 %v1470_v11, %v1468_v36  ;;  %v2352_v30 = vpack.i.bf16 %v1470_v11, %v1468_v36 }
 0xaeb   :  { %v2357_v45 = vpack.i.bf16 %v1471_v40, %v1469_v37  ;;  %v3090_v57 = vpack.c.bf16 %v1471_v40, %v1469_v37 }
 0xaec   :  { %2353 = vrot.lane.b32.xlu1 %v2352_v30, %s2467_s14 }
 0xaed   :  { %2358 = vrot.lane.b32.xlu0 %v2357_v45, %s2467_s14 }
 0xaf0   :  { %2363 = vrot.lane.b32.xlu1 %v2322_v41, %s2468_s15  ;;  %v925_v41 = vsel %vm90_vm2, %v2902_v49, 0.0 }
 0xaf1   :  { %2368 = vrot.lane.b32.xlu0 %v2327_v42, %s2468_s15  ;;  %v91_v42 = vsel %vm90_vm2, %v2531_v22, 0.0 }
 0xaf4   :  { %2373 = vrot.lane.b32.xlu1 %v2332_v59, %s2468_s15 }
 0xaf5   :  { %2378 = vrot.lane.b32.xlu0 %v2337_v1, %s2468_s15 }
 0xaf8   :  { %2383 = vrot.lane.b32.xlu1 %v2342_v21, %s2468_s15 }
 0xaf9   :  { %2388 = vrot.lane.b32.xlu0 %v2347_v26, %s2468_s15 }
 0xafc   :  { %2393 = vrot.lane.b32.xlu1 %v2352_v30, %s2468_s15 }
 0xafd   :  { %2398 = vrot.lane.b32.xlu0 %v2357_v45, %s2468_s15 }
 0xb1c   :  { %926 = vadd.xlane.f32.xlu0 %v925_v41 }
 0xb20   :  { %92 = vadd.xlane.f32.xlu1 %v91_v42 }
 0xb32   :  { %1607 = vperm.xlu0 %2230, %v1969_v10  }
 0xb46   :  { %v2324_v31 = vpop.permute.xlu1 %2323 }
 0xb47   :  { %v2326_v46 = vunpack.i.h.bf16 %v2324_v31  ;;  %v2325_v47 = vunpack.i.l.bf16 %v2324_v31  ;;  %v2329_v48 = vpop.permute.xlu0 %2328 }
 0xb48   :  { %v2331_v52 = vunpack.i.h.bf16 %v2329_v48  ;;  %v2330_v53 = vunpack.i.l.bf16 %v2329_v48 }
 0xb4a   :  { %v1504_v54 = vsel %vm189_vm3, %v2325_v47, %v2330_v53  ;;  %v1505_v49 = vsel %vm189_vm3, %v2326_v46, %v2331_v52  ;;  %v1512_v22 = vsel %vm189_vm3, %v2330_v53, %v2325_v47  ;;  %v1513_v56 = vsel %vm189_vm3, %v2331_v52, %v2326_v46 }
 0xb4b   :  { %v2145_v59 = vpack.c.bf16 %v1505_v49, %v1504_v54  ;;  %v2148_v60 = vpack.c.bf16 %v1513_v56, %v1512_v22 }
 0xb4d   :  { %2147 = vmatprep.subr.msk.bf16.mxu0 %vm2762_vm0, %v2145_v59 }
 0xb4e   :  { %v2334_v1 = vpop.permute.xlu1 %2333  ;;  %2150 = vmatpush1.bf16.msk.msra.mxu0 %vm2774_vm1, %v2148_v60 }
 0xb4f   :  { %v2336_v5 = vunpack.i.h.bf16 %v2334_v1  ;;  %v2335_v6 = vunpack.i.l.bf16 %v2334_v1  ;;  %v2339_v7 = vpop.permute.xlu0 %2338 }
 0xb50   :  { %v2341_v8 = vunpack.i.h.bf16 %v2339_v7  ;;  %v2340_v12 = vunpack.i.l.bf16 %v2339_v7 }
 0xb52   :  { %v1506_v13 = vsel %vm189_vm3, %v2335_v6, %v2340_v12  ;;  %v1507_v14 = vsel %vm189_vm3, %v2336_v5, %v2341_v8  ;;  %v1514_v15 = vsel %vm189_vm3, %v2340_v12, %v2335_v6  ;;  %v1515_v18 = vsel %vm189_vm3, %v2341_v8, %v2336_v5 }
 0xb53   :  { %v2151_v2 = vpack.c.bf16 %v1507_v14, %v1506_v13  ;;  %v2154_v62 = vpack.c.bf16 %v1515_v18, %v1514_v15 }
 0xb55   :  { %2153 = vmatprep.subr.msk.bf16.mxu0 %vm2762_vm0, %v2151_v2 }
 0xb56   :  { %v2344_v19 = vpop.permute.xlu1 %2343  ;;  %2156 = vmatpush1.bf16.msk.msra.mxu0 %vm2774_vm1, %v2154_v62 }
 0xb57   :  { %v2346_v23 = vunpack.i.h.bf16 %v2344_v19  ;;  %v2345_v21 = vunpack.i.l.bf16 %v2344_v19  ;;  %v2349_v24 = vpop.permute.xlu0 %2348 }
 0xb58   :  { %v2351_v26 = vunpack.i.h.bf16 %v2349_v24  ;;  %v2350_v28 = vunpack.i.l.bf16 %v2349_v24 }
 0xb5a   :  { %v1508_v29 = vsel %vm189_vm3, %v2345_v21, %v2350_v28  ;;  %v1509_v32 = vsel %vm189_vm3, %v2346_v23, %v2351_v26  ;;  %v1516_v38 = vsel %vm189_vm3, %v2350_v28, %v2345_v21  ;;  %v1517_v33 = vsel %vm189_vm3, %v2351_v26, %v2346_v23 }
 0xb5b   :  { %v2157_v63 = vpack.c.bf16 %v1509_v32, %v1508_v29  ;;  %v2160_v35 = vpack.c.bf16 %v1517_v33, %v1516_v38 }
 0xb5d   :  { %2159 = vmatprep.subr.msk.bf16.mxu0 %vm2762_vm0, %v2157_v63 }
 0xb5e   :  { %v2354_v36 = vpop.permute.xlu1 %2353  ;;  %2162 = vmatpush1.bf16.msk.msra.mxu0 %vm2774_vm1, %v2160_v35 }
 0xb5f   :  { %v2356_v11 = vunpack.i.h.bf16 %v2354_v36  ;;  %v2355_v37 = vunpack.i.l.bf16 %v2354_v36  ;;  %v2359_v40 = vpop.permute.xlu0 %2358 }
 0xb60   :  { %v2361_v30 = vunpack.i.h.bf16 %v2359_v40  ;;  %v2360_v45 = vunpack.i.l.bf16 %v2359_v40 }
 0xb62   :  { %v1510_v61 = vsel %vm189_vm3, %v2355_v37, %v2360_v45  ;;  %v1511_v41 = vsel %vm189_vm3, %v2356_v11, %v2361_v30  ;;  %v1518_v42 = vsel %vm189_vm3, %v2360_v45, %v2355_v37  ;;  %v1519_v10 = vsel %vm189_vm3, %v2361_v30, %v2356_v11  ;;  %v2364_v47 = vpop.permute.xlu1 %2363  ;;  %v1967_v30 = vld [vmem:[%s3257_s6 + $0x10] sm:$0xff]  ;;  %s2471_s6 = smov [#allocation2]  }
 0xb63   :  { %v2163_v31 = vpack.c.bf16 %v1511_v41, %v1510_v61  ;;  %v2166_v46 = vpack.c.bf16 %v1519_v10, %v1518_v42  ;;  %v2369_v48 = vpop.permute.xlu0 %2368  ;;  %v2366_v54 = vunpack.i.h.bf16 %v2364_v47  ;;  %v2365_v49 = vunpack.i.l.bf16 %v2364_v47  ;;  %s1817_s26 = sshll.u32 %s2471_s6, 4  ;;  %s1818_s26 = int_to_ptr.vmem [resolvable:$true] %s1817_s26 }
 0xb64   :  { %v2371_v22 = vunpack.i.h.bf16 %v2369_v48  ;;  %v2370_v56 = vunpack.i.l.bf16 %v2369_v48  ;;  %s2442_s27 = scalar_lea.vmem %s1818_s26, 256  ;;  %p2447_p1 = scmp.lt.s32.totalorder %s1818_s26, %s1818_s26 }
 0xb65   :  { %2165 = vmatprep.subr.msk.bf16.mxu0 %vm2762_vm0, %v2163_v31  ;;  %p2443_p0 = scmp.ne.s32.totalorder %s1818_s26, %s2442_s27  ;;  %p2448_p2 = scmp.lt.s32.totalorder %s2442_s27, %s2442_s27 }
 0xb66   :  { %2168 = vmatpush1.bf16.msk.msra.mxu0 %vm2774_vm1, %v2166_v46  ;;  %v2374_v52 = vpop.permute.xlu1 %2373  ;;  %v1576_v9 = vsel %vm198_vm6, %v2370_v56, %v2365_v49  ;;  %v1577_v16 = vsel %vm198_vm6, %v2371_v22, %v2366_v54 }
 0xb67   :  { %2170 = vmatprep.subr.bf16.mxu0 %v3072_v44  ;;  %v2379_v53 = vpop.permute.xlu0 %2378  ;;  %v2376_v59 = vunpack.i.h.bf16 %v2374_v52  ;;  %v2375_v60 = vunpack.i.l.bf16 %v2374_v52  ;;  %v2185_v5 = vpack.c.bf16 %v1577_v16, %v1576_v9  ;;  %p2449_p3 = por %p2448_p2, %p2447_p1 }
 0xb68   :  { %v2381_v1 = vunpack.i.h.bf16 %v2379_v53 }
 0xb69   :  { %p2450_p4 = pnand %p2449_p3, %p2443_p0 }
 0xb6a   :  { %2172 = vmatpush1.bf16.msra.mxu0 %v3070_v39  ;;  %v2384_v44 = vpop.permute.xlu1 %2383  ;;  %v1579_v14 = vsel %vm198_vm6, %v2381_v1, %v2376_v59  ;;  %v1571_v2 = vsel %vm198_vm6, %v2376_v59, %v2381_v1 }
 0xb6b   :  { %2174 = vmatprep.subr.bf16.mxu0 %v3078_v4  ;;  %v2389_v39 = vpop.permute.xlu0 %2388  ;;  %v2380_v4 = vunpack.i.l.bf16 %v2379_v53  ;;  %v2386_v6 = vunpack.i.h.bf16 %v2384_v44  ;;  %v2385_v7 = vunpack.i.l.bf16 %v2384_v44 }
 0xb6c   :  { %v2391_v8 = vunpack.i.h.bf16 %v2389_v39  ;;  %v2390_v12 = vunpack.i.l.bf16 %v2389_v39 }
 0xb6d   :  { %v1578_v13 = vsel %vm198_vm6, %v2380_v4, %v2375_v60  ;;  %v1570_v18 = vsel %vm198_vm6, %v2375_v60, %v2380_v4 }
 0xb6e   :  { %2176 = vmatpush1.bf16.msra.mxu0 %v3076_v55  ;;  %v1568_v55 = vsel %vm198_vm6, %v2365_v49, %v2370_v56  ;;  %v2191_v62 = vpack.c.bf16 %v1579_v14, %v1578_v13  ;;  %v1580_v19 = vsel %vm198_vm6, %v2390_v12, %v2385_v7  ;;  %v1581_v23 = vsel %vm198_vm6, %v2391_v8, %v2386_v6 }
 0xb6f   :  { %2178 = vmatprep.subr.bf16.mxu0 %v3084_v27  ;;  %v1569_v27 = vsel %vm198_vm6, %v2366_v54, %v2371_v22  ;;  %v2194_v28 = vpack.c.bf16 %v1571_v2, %v1570_v18  ;;  %v1572_v29 = vsel %vm198_vm6, %v2385_v7, %v2390_v12  ;;  %v1573_v32 = vsel %vm198_vm6, %v2386_v6, %v2391_v8 }
 0xb70   :  { %v2188_v15 = vpack.c.bf16 %v1569_v27, %v1568_v55  ;;  %v2197_v38 = vpack.c.bf16 %v1581_v23, %v1580_v19  ;;  %v2200_v35 = vpack.c.bf16 %v1573_v32, %v1572_v29  ;;  %v2427_v27 = vpop.eup %2426  ;;  %v1737_v2 = vadd.f32 1.837877, %v1735_v43 }
 0xb71   :  { %v873_v13 = vmul.f32 0.6931472, %v2427_v27 }
 0xb72   :  { %2180 = vmatpush1.bf16.msra.mxu0 %v3082_v20  ;;  %v2394_v20 = vpop.permute.xlu1 %2393 }
 0xb73   :  { %2182 = vmatprep.subr.bf16.mxu0 %v3090_v57  ;;  %v2399_v57 = vpop.permute.xlu0 %2398  ;;  %v2395_v21 = vunpack.i.l.bf16 %v2394_v20 }
 0xb74   :  { %v2401_v24 = vunpack.i.h.bf16 %v2399_v57  ;;  %v2400_v26 = vunpack.i.l.bf16 %v2399_v57 }
 0xb76   :  { %2184 = vmatpush1.bf16.msra.mxu0 %v3088_v58  ;;  %v2396_v58 = vunpack.i.h.bf16 %v2394_v20  ;;  %v1582_v33 = vsel %vm198_vm6, %v2400_v26, %v2395_v21  ;;  %v1574_v36 = vsel %vm198_vm6, %v2395_v21, %v2400_v26  ;;  %v878_v20 = vrot.slane %v873_v13, 4 }
 0xb77   :  { %2187 = vmatprep.subr.msk.bf16.mxu0 %vm2833_vm15, %v2185_v5  ;;  %v2429_v5 = vpop.eup %2428 }
 0xb78   :  { %v1583_v63 = vsel %vm198_vm6, %v2401_v24, %v2396_v58  ;;  %v1575_v11 = vsel %vm198_vm6, %v2396_v58, %v2401_v24  ;;  %v875_v14 = vmul.f32 0.6931472, %v2429_v5  ;;  %v882_v18 = vsel %vm209_vm7, %v878_v20, 0.0 }
 0xb79   :  { %v2203_v37 = vpack.c.bf16 %v1583_v63, %v1582_v33  ;;  %v2206_v40 = vpack.c.bf16 %v1575_v11, %v1574_v36  ;;  %v883_v58 = vrot.slane %v882_v18, 4 }
 0xb7a   :  { %2190 = vmatpush1.bf16.msk.msra.mxu0 %vm2846_vm10, %v2188_v15  ;;  %v879_v57 = vrot.slane %v875_v14, 4  ;;  %v1736_v15 = vadd.f32 1.837877, %v1734_v25 }
 0xb7b   :  { %2193 = vmatprep.subr.msk.bf16.mxu0 %vm2833_vm15, %v2191_v62  ;;  %v884_v32 = vadd.f32 %v883_v58, %v882_v18 }
 0xb7c   :  { %v889_v62 = vsel %vm209_vm7, %v879_v57, 0.0  ;;  %v1738_v24 = vmul.f32 -0.5, %v1736_v15 }
 0xb7e   :  { %2196 = vmatpush1.bf16.msk.msra.mxu0 %vm2846_vm10, %v2194_v28 }
 0xb7f   :  { %2199 = vmatprep.subr.msk.bf16.mxu0 %vm2833_vm15, %v2197_v38 }
 0xb82   :  { %2202 = vmatpush1.bf16.msk.msra.mxu0 %vm2846_vm10, %v2200_v35 }
 0xb83   :  { %2205 = vmatprep.subr.msk.bf16.mxu0 %vm2833_vm15, %v2203_v37 }
 0xb86   :  { %2208 = vmatpush1.bf16.msk.msra.mxu0 %vm2846_vm10, %v2206_v40 }
 0xb89   :  { %1678 = vmatmul.mubr.f32.vlgmr.msra.gmra.mrb[34].mxu0 %v1967_v30 }
 0xba9   :  { %v927_v45 = vpop.xlane.xlu0 %926 }
 0xbaa   :  { %v928_v61 = vrot.slane %v927_v45, 4 }
 0xbac   :  { %v929_v51 = vadd.f32 %v928_v61, %v927_v45 }
 0xbad   :  { %v93_v41 = vpop.xlane.xlu1 %92 }
 0xbae   :  { %v930_v42 = vrot.slane %v929_v51, 2  ;;  %v94_v10 = vrot.slane %v93_v41, 4 }
 0xbb0   :  { %v95_v31 = vadd.f32 %v94_v10, %v93_v41  ;;  %v931_v46 = vadd.f32 %v930_v42, %v929_v51 }
 0xbb1   :  { %v1608_v54 = vpop.permute.xlu0 %1607 }
 0xbb2   :  { %v96_v47 = vrot.slane %v95_v31, 2  ;;  %v932_v48 = vrot.slane %v931_v46, 1 }
 0xbb4   :  { %v97_v17 = vadd.f32 %v96_v47, %v95_v31  ;;  %v933_v34 = vadd.f32 %v932_v48, %v931_v46 }
 0xbb6   :  { %v98_v52 = vrot.slane %v97_v17, 1 }
 0xbb8   :  { %v99_v53 = vadd.f32 %v98_v52, %v97_v17 }
 0xbba   :  { %2209 = vpush %v99_v53 }
 0xbbb   :  { %2211 = vpush %v933_v34 }
 0xc5c   :  { %v1679_v49 = vpop.f32.mrb[34].mxu0 }
 0xc5d   :  { %v1680_v22 = vadd.f32 %v1679_v49, %v1608_v54  ;;  %v1681_v56 = vpop.f32.mrb[35].mxu0 }
 0xc5e   :  { %v1682_v9 = vadd.f32 %v1681_v56, %v1608_v54 }
 0xc5f   :  { %v1684_v16 = vadd.f32 2.0, %v1680_v22  ;;  %v1700_v44 = vrot.slane %v1680_v22, 4 }
 0xc60   :  { %v1685_v39 = vadd.f32 2.0, %v1682_v9  ;;  %v1701_v59 = vrot.slane %v1682_v9, 4 }
 0xc61   :  { %v2035_v60 = vmul.f32 -1.442695, %v1684_v16  ;;  %v1704_v1 = vadd.f32 %v1700_v44, %v2910_v3  ;;  %v890_v3 = vrot.slane %v889_v62, 4 }
 0xc62   :  { %v2036_v4 = vmul.f32 -1.442695, %v1685_v39  ;;  %v1705_v55 = vadd.f32 %v1701_v59, %v2913_v0  ;;  %v1739_v0 = vmul.f32 -0.5, %v1737_v2 }
 0xc63   :  { %2430 = vpow2.f32 %v2035_v60 }
 0xc64   :  { %2432 = vpow2.f32 %v2036_v4 }
 0xc6d   :  { %v2431_v6 = vpop.eup %2430 }
 0xc6e   :  { %v2433_v7 = vpop.eup %2432  ;;  %v1692_v8 = vadd.f32 1.0, %v2431_v6 }
 0xc6f   :  { %v1693_v12 = vadd.f32 1.0, %v2433_v7 }
 0xc70   :  { %2434 = vrcp.f32 %v1692_v8 }
 0xc71   :  { %2436 = vrcp.f32 %v1693_v12 }
 0xc7a   :  { %v2435_v19 = vpop.eup %2434 }
 0xc7b   :  { %v2437_v23 = vpop.eup %2436  ;;  %v1706_v21 = vmul.f32 %v2435_v19, %v1704_v1  ;;  %2438 = vlog2.f32 %v2435_v19 }
 0xc7c   :  { %v1707_v26 = vmul.f32 %v2437_v23, %v1705_v55  ;;  %2440 = vlog2.f32 %v2437_v23 }
 0xc7d   :  { %v1756_v28 = vmul.f32 %v1706_v21, %v1706_v21  ;;  %1786 = vst [vmem:[#allocation2] sm:$0xf0] %v1706_v21 }
 0xc7e   :  { %v1757_v29 = vmul.f32 %v1707_v26, %v1707_v26  ;;  %1787 = vst [vmem:[#allocation2 + $0x8] sm:$0xf0] %v1707_v26 }
 0xc7f   :  { %v1758_v38 = vadd.f32 1.837877, %v1756_v28 }
 0xc80   :  { %2453 = shalt.err (!%p2450_p4)
}
 0xc81   :  { %s2454_s29 = scalar_lea.hbm %s3259_s8, 256 }
 0xc82   :  { %p2455_p5 = scmp.ne.s32.totalorder %s3259_s8, %s2454_s29  ;;  %p2458_p6 = scmp.lt.u32.totalorder %s2454_s29, %s3259_s8 }
 0xc84   :  { %p2460_p7 = pnand %p2458_p6, %p2455_p5 }
 0xc86   :  { %2463 = shalt.err (!%p2460_p7)
}
 0xc87   :  { %1820 = dma.vmem_to_hbm [thread:$0]  %s1818_s26, 256, %s3259_s8, [#allocation3]   ;;  %v1740_v33 = vsel %vm209_vm7, %v1738_v24, 0.0  ;;  %v891_v63 = vadd.f32 %v890_v3, %v889_v62  ;;  %v1759_v35 = vadd.f32 1.837877, %v1757_v29  ;;  %v1747_v36 = vsel %vm209_vm7, %v1739_v0, 0.0  ;;  %v2439_v42 = vpop.eup %2438 }
 0xc88   :  { %v1760_v11 = vmul.f32 -0.5, %v1758_v38  ;;  %v1741_v40 = vrot.slane %v1740_v33, 4  ;;  %v885_v30 = vrot.slane %v884_v32, 2  ;;  %v1748_v61 = vrot.slane %v1747_v36, 4  ;;  %v2441_v31 = vpop.eup %2440  ;;  %s2210_s8 = spop %2209 }
 0xc89   :  { %v1761_v37 = vmul.f32 -0.5, %v1759_v35  ;;  %v892_v51 = vrot.slane %v891_v63, 2  ;;  %v1709_v46 = vmul.f32 0.6931472, %v2439_v42  ;;  %v1711_v53 = vmul.f32 0.6931472, %v2441_v31  ;;  %s2212_s0 = spop %2211 }
 0xc8a   :  { %v1764_v45 = vrot.slane %v1760_v11, 4  ;;  %v1742_v48 = vadd.f32 %v1741_v40, %v1740_v33  ;;  %v886_v52 = vadd.f32 %v885_v30, %v884_v32  ;;  %v1749_v54 = vadd.f32 %v1748_v61, %v1747_v36 }
 0xc8b   :  { %v1765_v41 = vrot.slane %v1761_v37, 4  ;;  %v893_v49 = vadd.f32 %v892_v51, %v891_v63  ;;  %v1714_v22 = vrot.slane %v1709_v46, 4  ;;  %v1715_v9 = vrot.slane %v1711_v53, 4 }
 0xc8c   :  { %v1768_v10 = vsel %vm209_vm7, %v1764_v45, 0.0  ;;  %v1743_v39 = vrot.slane %v1742_v48, 2  ;;  %v887_v59 = vrot.slane %v886_v52, 1  ;;  %v1750_v4 = vrot.slane %v1749_v54, 2 }
 0xc8d   :  { %v1769_v47 = vrot.slane %v1768_v10, 4  ;;  %v1775_v17 = vsel %vm209_vm7, %v1765_v41, 0.0  ;;  %v1718_v16 = vsel %vm209_vm7, %v1714_v22, 0.0  ;;  %v1725_v1 = vsel %vm209_vm7, %v1715_v9, 0.0 }
 0xc8e   :  { %v1776_v34 = vrot.slane %v1775_v17, 4  ;;  %v1719_v60 = vrot.slane %v1718_v16, 4  ;;  %v894_v55 = vrot.slane %v893_v49, 1  ;;  %v1726_v27 = vrot.slane %v1725_v1, 4 }
 0xc8f   :  { %v1770_v56 = vadd.f32 %v1769_v47, %v1768_v10  ;;  %v101_v7 = vstv %s2210_s8  ;;  %v1744_v13 = vadd.f32 %v1743_v39, %v1742_v48  ;;  %v888_v14 = vadd.f32 %v887_v59, %v886_v52 }
 0xc90   :  { %v1777_v44 = vadd.f32 %v1776_v34, %v1775_v17  ;;  %v1720_v5 = vadd.f32 %v1719_v60, %v1718_v16  ;;  %v1727_v8 = vadd.f32 %v1726_v27, %v1725_v1  ;;  %v1751_v20 = vadd.f32 %v1750_v4, %v1749_v54 }
 0xc91   :  { %v1771_v6 = vrot.slane %v1770_v56, 2  ;;  %v895_v43 = vadd.f32 %v894_v55, %v893_v49  ;;  %v896_v15 = vadd.f32 %v888_v14, %v101_v7  ;;  %v1745_v58 = vrot.slane %v1744_v13, 1 }
 0xc92   :  { %v1778_v12 = vrot.slane %v1777_v44, 2  ;;  %v1721_v25 = vrot.slane %v1720_v5, 2  ;;  %v1728_v57 = vrot.slane %v1727_v8, 2  ;;  %v1752_v24 = vrot.slane %v1751_v20, 1 }
 0xc93   :  { %v1772_v2 = vadd.f32 %v1771_v6, %v1770_v56  ;;  %v897_v62 = vadd.f32 %v895_v43, %v101_v7  ;;  %v935_v3 = vstv %s2212_s0  ;;  %v2472_v0 = vmov 1966171168  }
 0xc94   :  { %v1722_v18 = vadd.f32 %v1721_v25, %v1720_v5  ;;  %v1729_v19 = vadd.f32 %v1728_v57, %v1727_v8  ;;  %v1779_v23 = vadd.f32 %v1778_v12, %v1777_v44  ;;  %v1792_v28 = vunpack.c.l.s4 %v2472_v0 }
 0xc95   :  { %v936_v29 = vadd.f32 %v935_v3, %v896_v15  ;;  %v1773_v38 = vrot.slane %v1772_v2, 1  ;;  %v937_v33 = vadd.f32 %v935_v3, %v897_v62  ;;  %v1746_v36 = vadd.f32 %v1745_v58, %v1744_v13 }
 0xc96   :  { %v1723_v21 = vrot.slane %v1722_v18, 1  ;;  %v1730_v26 = vrot.slane %v1729_v19, 1  ;;  %v1780_v35 = vrot.slane %v1779_v23, 1  ;;  %v1753_v37 = vadd.f32 %v1752_v24, %v1751_v20 }
 0xc97   :  { %v1793_v30 = vunpack.c.0.s8 %v1792_v28  ;;  %v1795_v45 = vshrl.u32 %v32_v50, 7  ;;  %v1774_v51 = vadd.f32 %v1773_v38, %v1772_v2  ;;  %vm1808_vm3 = vcmp.lt.s32.totalorder %v32_v50, 256 }
 0xc98   :  { %v1724_v32 = vadd.f32 %v1723_v21, %v1722_v18  ;;  %v1731_v63 = vadd.f32 %v1730_v26, %v1729_v19  ;;  %v1781_v42 = vadd.f32 %v1780_v35, %v1779_v23 }
 0xc99   :  { %v1796_v46 = vsub.s32 %v1793_v30, %v1795_v45 }
 0xc9a   :  { %v1732_v11 = vadd.f32 %v1724_v32, %v936_v29  ;;  %v1733_v40 = vadd.f32 %v1731_v63, %v937_v33 }
 0xc9c   :  { %v1754_v61 = vadd.f32 %v1746_v36, %v1732_v11  ;;  %v1755_v41 = vadd.f32 %v1753_v37, %v1733_v40 }
 0xc9e   :  { %v1782_v10 = vadd.f32 %v1774_v51, %v1754_v61  ;;  %v1783_v31 = vadd.f32 %v1781_v42, %v1755_v41 }
 0xca0   :  { %v1790_v47 = vcombine.low %v1782_v10, %v1783_v31 }
 0xca2   :  { %v1797_v17 = vrot.slane %v1790_v47, %v1796_v46 }
 0xca4   :  { %v1804_v48 = vrot.slane %v1797_v17, %v1796_v46 }
 0xca6   :  { %1810 = vst.msk [vmem:[%s3260_s9] sm:$0x3] %vm1808_vm3, %v1804_v48 }
 0xca7   :  { %2464 = dma.done.wait [#allocation3], 256  }
 0xca8   :  { %2465 = vsyncadd [#allocation3], 4294967040 }
 0xca9   :  { %1828 = vsyncpa [#allocation3], 1 }

</bundles_post_ra>
